<compile_context>
chip_gen: v7x
topology: tpu7x:2x2x1
jax: 0.10.0
libtpu: 0.0.40
codegen_flags: <defaults>
</compile_context>

<pallas_src>
import functools
import math

import jax
import jax.numpy as jnp
from jax import lax
from jax.experimental import pallas as pl
from jax.experimental.pallas import tpu as pltpu

# Keep f32 matmuls (reference einsums + the kernel's f32 path) at full
# precision so the 1e-4 comparison is meaningful on every TPU generation.
# The bf16 production path is unaffected (native single-pass bf16 MXU).
jax.config.update("jax_default_matmul_precision", "highest")


# ---------------------------------------------------------------------------
# Fused MHA kernel: one grid step == one batch element, all heads inside.
# ---------------------------------------------------------------------------
def _fused_mha_kernel(q_ref, kv_ref, bias_ref, wq_ref, bq_ref, wkv_ref,
                      bkv_ref, wo_ref, bo_ref, o_ref, *,
                      num_heads, dk, dv, scale, compute_dtype):
    f32 = jnp.float32
    prec = (lax.Precision.HIGHEST if compute_dtype == jnp.float32
            else lax.Precision.DEFAULT)

    def mm(a, b):
        return jnp.dot(a.astype(compute_dtype), b.astype(compute_dtype),
                       preferred_element_type=f32, precision=prec)

    x_q = q_ref[0]                          # (Lq, E)
    x_kv = kv_ref[0]                        # (Lkv, E)
    bias = bias_ref[0].astype(f32)          # (1, Lkv) key-padding bias

    # Fused projections: two wide, lane-dense MXU matmuls with f32 accumulate.
    q = mm(x_q, wq_ref[...]) + bq_ref[...].astype(f32)        # (Lq, Pk)
    kv = mm(x_kv, wkv_ref[...]) + bkv_ref[...].astype(f32)    # (Lkv, Pk+Pv)

    pk = num_heads * dk
    lq = x_q.shape[0]
    e_out = wo_ref.shape[1]

    # Per-head attention, statically unrolled (H is small).  Heads are sliced
    # straight out of the projected activations -- no reshape/transpose.
    acc = jnp.zeros((lq, e_out), f32)
    for h in range(num_heads):
        qh = q[:, h * dk:(h + 1) * dk] * scale      # scale folded into small Q tile
        kh = kv[:, h * dk:(h + 1) * dk]
        vh = kv[:, pk + h * dv: pk + (h + 1) * dv]

        # scores = (qh*scale) @ kh^T + bias  (contract over dk, no transpose copy)
        s = lax.dot_general(qh.astype(compute_dtype), kh.astype(compute_dtype),
                            (((1,), (1,)), ((), ())),
                            preferred_element_type=f32, precision=prec)
        s = s + bias

        # numerically stable softmax over keys
        m = jnp.max(s, axis=-1, keepdims=True)
        p = jnp.exp(s - m)
        l = jnp.sum(p, axis=-1, keepdims=True)

        oh = mm(p, vh) * (1.0 / l)                  # (Lq, dv)
        # Head-decomposed out-projection: acc += O_h @ Wo[h*dv:(h+1)*dv, :]
        acc = acc + mm(oh, wo_ref[h * dv:(h + 1) * dv, :])

    o_ref[0] = (acc + bo_ref[...].astype(f32)).astype(o_ref.dtype)


def xformers_mha_pallas(query, key_value, wq, bq, wk, bk, wv, bv, wo, bo,
                        num_heads, key_padding_mask=None,
                        compute_dtype=jnp.float32):
    """query: (B, Lq, E); key_value: (B, Lkv, E);
    key_padding_mask: (B, Lkv) bool, True = pad.  Returns (B, Lq, E)."""
    B, Lq, E = query.shape
    Lkv = key_value.shape[1]
    Pk = wq.shape[1]
    Pv = wv.shape[1]
    dk = Pk // num_heads
    dv = Pv // num_heads
    Eout = wo.shape[1]

    # Fuse the K and V projection weights into one (E, Pk+Pv) matmul per step.
    wkv = jnp.concatenate([wk, wv], axis=1)
    bkv = jnp.concatenate([bk, bv], axis=0).reshape(1, Pk + Pv)
    bq2 = bq.reshape(1, Pk)
    bo2 = bo.reshape(1, Eout)

    if key_padding_mask is None:
        bias = jnp.zeros((B, 1, Lkv), jnp.float32)
    else:
        bias = jnp.where(key_padding_mask, -1e9, 0.0).astype(jnp.float32)
        bias = bias.reshape(B, 1, Lkv)

    scale = 1.0 / math.sqrt(dk)

    kernel = functools.partial(
        _fused_mha_kernel, num_heads=num_heads, dk=dk, dv=dv, scale=scale,
        compute_dtype=compute_dtype)

    return pl.pallas_call(
        kernel,
        out_shape=jax.ShapeDtypeStruct((B, Lq, Eout), query.dtype),
        grid_spec=pltpu.PrefetchScalarGridSpec(
            num_scalar_prefetch=0,
            grid=(B,),
            in_specs=[
                pl.BlockSpec((1, Lq, E), lambda b: (b, 0, 0)),       # query
                pl.BlockSpec((1, Lkv, E), lambda b: (b, 0, 0)),      # key_value
                pl.BlockSpec((1, 1, Lkv), lambda b: (b, 0, 0)),      # key-pad bias
                pl.BlockSpec((E, Pk), lambda b: (0, 0)),             # Wq (resident)
                pl.BlockSpec((1, Pk), lambda b: (0, 0)),             # bq
                pl.BlockSpec((E, Pk + Pv), lambda b: (0, 0)),        # [Wk|Wv]
                pl.BlockSpec((1, Pk + Pv), lambda b: (0, 0)),        # [bk|bv]
                pl.BlockSpec((Pv, Eout), lambda b: (0, 0)),          # Wo
                pl.BlockSpec((1, Eout), lambda b: (0, 0)),           # bo
            ],
            out_specs=pl.BlockSpec((1, Lq, Eout), lambda b: (b, 0, 0)),
        ),
        compiler_params=pltpu.CompilerParams(
            dimension_semantics=("parallel",)),
    )(query, key_value, bias, wq, bq2, wkv, bkv, wo, bo2)


# ---------------------------------------------------------------------------
# Pure-JAX reference
# ---------------------------------------------------------------------------
def mha_reference(query, key_value, wq, bq, wk, bk, wv, bv, wo, bo,
                  num_heads, key_padding_mask=None):
    B, Lq, E = query.shape
    Lkv = key_value.shape[1]
    dk = wq.shape[1] // num_heads
    dv = wv.shape[1] // num_heads
    q = (query @ wq + bq).reshape(B, Lq, num_heads, dk).transpose(0, 2, 1, 3)
    k = (key_value @ wk + bk).reshape(B, Lkv, num_heads, dk).transpose(0, 2, 1, 3)
    v = (key_value @ wv + bv).reshape(B, Lkv, num_heads, dv).transpose(0, 2, 1, 3)
    s = jnp.einsum("bhqd,bhkd->bhqk", q, k) / math.sqrt(dk)
    if key_padding_mask is not None:
        s = s + jnp.where(key_padding_mask, -1e9, 0.0)[:, None, None, :]
    p = jax.nn.softmax(s, axis=-1)
    o = jnp.einsum("bhqk,bhkd->bhqd", p, v)
    o = o.transpose(0, 2, 1, 3).reshape(B, Lq, num_heads * dv)
    return o @ wo + bo


if __name__ == "__main__":
    # Small shapes consistent with the module: embed_dim=64, 4 heads, B=2,
    # L_q=16 queries attending over L_kv=24 keys with a key-padding mask.
    embed_dim, num_heads = 64, 4
    B, Lq, Lkv = 2, 16, 24

    key = jax.random.PRNGKey(0)
    ks = jax.random.split(key, 10)
    query = jax.random.normal(ks[0], (B, Lq, embed_dim), jnp.float32)
    key_value = jax.random.normal(ks[1], (B, Lkv, embed_dim), jnp.float32)

    def lin_init(kw, kb, fan_in, fan_out):
        w = jax.random.normal(kw, (fan_in, fan_out), jnp.float32) / math.sqrt(fan_in)
        b = jax.random.normal(kb, (fan_out,), jnp.float32) * 0.02
        return w, b

    wq, bq = lin_init(ks[2], ks[3], embed_dim, embed_dim)
    wk, bk = lin_init(ks[4], ks[5], embed_dim, embed_dim)
    wv, bv = lin_init(ks[6], ks[7], embed_dim, embed_dim)
    wo, bo = lin_init(ks[8], ks[9], embed_dim, embed_dim)

    # key_padding_mask: True = padded key position (last keys of each batch).
    lengths = jnp.array([16, 20], jnp.int32)
    key_padding_mask = jnp.arange(Lkv)[None, :] >= lengths[:, None]

    ref = mha_reference(query, key_value, wq, bq, wk, bk, wv, bv, wo, bo,
                        num_heads, key_padding_mask)

    # --- f32-operand path: tight parity with the reference --------------------
    out = xformers_mha_pallas(query, key_value, wq, bq, wk, bk, wv, bv, wo, bo,
                              num_heads, key_padding_mask,
                              compute_dtype=jnp.float32)
    out = jax.block_until_ready(out)
    assert out.shape == (B, Lq, embed_dim) and out.dtype == query.dtype
    assert jnp.allclose(out, ref, atol=1e-4, rtol=1e-4), \
        float(jnp.max(jnp.abs(out - ref)))

    # --- bf16-operand / f32-accumulate production path (native MXU) -----------
    # Typical max-abs error vs the f32 reference is ~1e-2; assert loosely.
    out_bf16 = xformers_mha_pallas(query, key_value, wq, bq, wk, bk, wv, bv,
                                   wo, bo, num_heads, key_padding_mask,
                                   compute_dtype=jnp.bfloat16)
    out_bf16 = jax.block_until_ready(out_bf16)
    assert out_bf16.shape == (B, Lq, embed_dim)
    assert float(jnp.max(jnp.abs(out_bf16 - ref))) < 0.25

    print("KERNEL_OK")
</pallas_src>

<mosaic_0001>
module attributes {stable_mosaic.version = 11 : i64} {
  func.func @_fused_mha_kernel(%arg0: i32, %arg1: memref<1x16x64xf32, #tpu.memory_space<vmem>>, %arg2: memref<1x24x64xf32, #tpu.memory_space<vmem>>, %arg3: memref<1x1x24xf32, #tpu.memory_space<vmem>>, %arg4: memref<64x64xf32, #tpu.memory_space<vmem>>, %arg5: memref<1x64xf32, #tpu.memory_space<vmem>>, %arg6: memref<64x128xf32, #tpu.memory_space<vmem>>, %arg7: memref<1x128xf32, #tpu.memory_space<vmem>>, %arg8: memref<64x64xf32, #tpu.memory_space<vmem>>, %arg9: memref<1x64xf32, #tpu.memory_space<vmem>>, %arg10: memref<1x16x64xf32, #tpu.memory_space<vmem>>) attributes {dimension_semantics = [#tpu.dimension_semantics<parallel>], iteration_bounds = array<i64: 2>, scalar_prefetch = 0 : i64, scratch_operands = 0 : i64, tpu.core_type = #tpu.core_type<tc>, window_params = [{transform_indices = @transform_0, window_bounds = array<i64: 1, 16, 64>}, {transform_indices = @transform_1, window_bounds = array<i64: 1, 24, 64>}, {transform_indices = @transform_2, window_bounds = array<i64: 1, 1, 24>}, {pipeline_mode = #tpu.pipeline_mode<synchronous>, transform_indices = @transform_3, window_bounds = array<i64: 64, 64>}, {pipeline_mode = #tpu.pipeline_mode<synchronous>, transform_indices = @transform_4, window_bounds = array<i64: 1, 64>}, {pipeline_mode = #tpu.pipeline_mode<synchronous>, transform_indices = @transform_5, window_bounds = array<i64: 64, 128>}, {pipeline_mode = #tpu.pipeline_mode<synchronous>, transform_indices = @transform_6, window_bounds = array<i64: 1, 128>}, {pipeline_mode = #tpu.pipeline_mode<synchronous>, transform_indices = @transform_7, window_bounds = array<i64: 64, 64>}, {pipeline_mode = #tpu.pipeline_mode<synchronous>, transform_indices = @transform_8, window_bounds = array<i64: 1, 64>}, {transform_indices = @transform_9, window_bounds = array<i64: 1, 16, 64>}]} {
    %c0 = arith.constant 0 : index
    %c0_0 = arith.constant 0 : index
    %c0_1 = arith.constant 0 : index
    %0 = vector.load %arg1[%c0, %c0_0, %c0_1] : memref<1x16x64xf32, #tpu.memory_space<vmem>>, vector<1x16x64xf32>
    %1 = vector.shape_cast %0 : vector<1x16x64xf32> to vector<16x64xf32>
    %c0_2 = arith.constant 0 : index
    %c0_3 = arith.constant 0 : index
    %c0_4 = arith.constant 0 : index
    %2 = vector.load %arg2[%c0_2, %c0_3, %c0_4] : memref<1x24x64xf32, #tpu.memory_space<vmem>>, vector<1x24x64xf32>
    %3 = vector.shape_cast %2 : vector<1x24x64xf32> to vector<24x64xf32>
    %c0_5 = arith.constant 0 : index
    %c0_6 = arith.constant 0 : index
    %c0_7 = arith.constant 0 : index
    %4 = vector.load %arg3[%c0_5, %c0_6, %c0_7] : memref<1x1x24xf32, #tpu.memory_space<vmem>>, vector<1x1x24xf32>
    %5 = vector.shape_cast %4 : vector<1x1x24xf32> to vector<1x24xf32>
    %c0_8 = arith.constant 0 : index
    %c0_9 = arith.constant 0 : index
    %6 = vector.load %arg4[%c0_8, %c0_9] : memref<64x64xf32, #tpu.memory_space<vmem>>, vector<64x64xf32>
    %cst = arith.constant dense<0.000000e+00> : vector<16x64xf32>
    %7 = tpu.matmul %1, %6, %cst {dimension_numbers = #tpu.dot_dimension_numbers<[1], [0], [0], [1], [0, 0, 1, 1], [], []>, precision = #tpu.contract_precision<fp32>} : vector<16x64xf32>, vector<64x64xf32>, vector<16x64xf32> -> vector<16x64xf32>
    %c0_10 = arith.constant 0 : index
    %c0_11 = arith.constant 0 : index
    %8 = vector.load %arg5[%c0_10, %c0_11] : memref<1x64xf32, #tpu.memory_space<vmem>>, vector<1x64xf32>
    %9 = vector.broadcast %8 : vector<1x64xf32> to vector<16x64xf32>
    %10 = arith.addf %7, %9 : vector<16x64xf32>
    %c0_12 = arith.constant 0 : index
    %c0_13 = arith.constant 0 : index
    %11 = vector.load %arg6[%c0_12, %c0_13] : memref<64x128xf32, #tpu.memory_space<vmem>>, vector<64x128xf32>
    %cst_14 = arith.constant dense<0.000000e+00> : vector<24x128xf32>
    %12 = tpu.matmul %3, %11, %cst_14 {dimension_numbers = #tpu.dot_dimension_numbers<[1], [0], [0], [1], [0, 0, 1, 1], [], []>, precision = #tpu.contract_precision<fp32>} : vector<24x64xf32>, vector<64x128xf32>, vector<24x128xf32> -> vector<24x128xf32>
    %c0_15 = arith.constant 0 : index
    %c0_16 = arith.constant 0 : index
    %13 = vector.load %arg7[%c0_15, %c0_16] : memref<1x128xf32, #tpu.memory_space<vmem>>, vector<1x128xf32>
    %14 = vector.broadcast %13 : vector<1x128xf32> to vector<24x128xf32>
    %15 = arith.addf %12, %14 : vector<24x128xf32>
    %cst_17 = arith.constant 0.000000e+00 : f32
    %16 = vector.broadcast %cst_17 : f32 to vector<16x64xf32>
    %17 = vector.extract_strided_slice %10 {offsets = [0, 0], sizes = [16, 16], strides = [1, 1]} : vector<16x64xf32> to vector<16x16xf32>
    %cst_18 = arith.constant 2.500000e-01 : f32
    %18 = vector.broadcast %cst_18 : f32 to vector<16x16xf32>
    %19 = arith.mulf %17, %18 : vector<16x16xf32>
    %20 = vector.extract_strided_slice %15 {offsets = [0, 0], sizes = [24, 16], strides = [1, 1]} : vector<24x128xf32> to vector<24x16xf32>
    %21 = vector.extract_strided_slice %15 {offsets = [0, 64], sizes = [24, 16], strides = [1, 1]} : vector<24x128xf32> to vector<24x16xf32>
    %cst_19 = arith.constant dense<0.000000e+00> : vector<16x24xf32>
    %22 = tpu.matmul %19, %20, %cst_19 {dimension_numbers = #tpu.dot_dimension_numbers<[1], [1], [0], [0], [0, 0, 1, 0], [], []>, precision = #tpu.contract_precision<fp32>} : vector<16x16xf32>, vector<24x16xf32>, vector<16x24xf32> -> vector<16x24xf32>
    %23 = vector.broadcast %5 : vector<1x24xf32> to vector<16x24xf32>
    %24 = arith.addf %22, %23 : vector<16x24xf32>
    %cst_20 = arith.constant dense<0xFF800000> : vector<16xf32>
    %25 = vector.multi_reduction <maximumf>, %24, %cst_20 [1] : vector<16x24xf32> to vector<16xf32>
    %26 = vector.shape_cast %25 : vector<16xf32> to vector<16x1xf32>
    %27 = vector.broadcast %26 : vector<16x1xf32> to vector<16x24xf32>
    %28 = arith.subf %24, %27 : vector<16x24xf32>
    %29 = math.exp %28 : vector<16x24xf32>
    %cst_21 = arith.constant dense<0.000000e+00> : vector<16xf32>
    %30 = vector.multi_reduction <add>, %29, %cst_21 [1] : vector<16x24xf32> to vector<16xf32>
    %31 = vector.shape_cast %30 : vector<16xf32> to vector<16x1xf32>
    %cst_22 = arith.constant dense<0.000000e+00> : vector<16x16xf32>
    %32 = tpu.matmul %29, %21, %cst_22 {dimension_numbers = #tpu.dot_dimension_numbers<[1], [0], [0], [1], [0, 0, 1, 1], [], []>, precision = #tpu.contract_precision<fp32>} : vector<16x24xf32>, vector<24x16xf32>, vector<16x16xf32> -> vector<16x16xf32>
    %cst_23 = arith.constant 1.000000e+00 : f32
    %33 = vector.broadcast %cst_23 : f32 to vector<16x1xf32>
    %34 = arith.divf %33, %31 : vector<16x1xf32>
    %35 = vector.broadcast %34 : vector<16x1xf32> to vector<16x16xf32>
    %36 = arith.mulf %32, %35 : vector<16x16xf32>
    %c0_24 = arith.constant 0 : index
    %c0_25 = arith.constant 0 : index
    %37 = vector.load %arg8[%c0_24, %c0_25] : memref<64x64xf32, #tpu.memory_space<vmem>>, vector<16x64xf32>
    %cst_26 = arith.constant dense<0.000000e+00> : vector<16x64xf32>
    %38 = tpu.matmul %36, %37, %cst_26 {dimension_numbers = #tpu.dot_dimension_numbers<[1], [0], [0], [1], [0, 0, 1, 1], [], []>, precision = #tpu.contract_precision<fp32>} : vector<16x16xf32>, vector<16x64xf32>, vector<16x64xf32> -> vector<16x64xf32>
    %39 = arith.addf %16, %38 : vector<16x64xf32>
    %40 = vector.extract_strided_slice %10 {offsets = [0, 16], sizes = [16, 16], strides = [1, 1]} : vector<16x64xf32> to vector<16x16xf32>
    %cst_27 = arith.constant 2.500000e-01 : f32
    %41 = vector.broadcast %cst_27 : f32 to vector<16x16xf32>
    %42 = arith.mulf %40, %41 : vector<16x16xf32>
    %43 = vector.extract_strided_slice %15 {offsets = [0, 16], sizes = [24, 16], strides = [1, 1]} : vector<24x128xf32> to vector<24x16xf32>
    %44 = vector.extract_strided_slice %15 {offsets = [0, 80], sizes = [24, 16], strides = [1, 1]} : vector<24x128xf32> to vector<24x16xf32>
    %cst_28 = arith.constant dense<0.000000e+00> : vector<16x24xf32>
    %45 = tpu.matmul %42, %43, %cst_28 {dimension_numbers = #tpu.dot_dimension_numbers<[1], [1], [0], [0], [0, 0, 1, 0], [], []>, precision = #tpu.contract_precision<fp32>} : vector<16x16xf32>, vector<24x16xf32>, vector<16x24xf32> -> vector<16x24xf32>
    %46 = vector.broadcast %5 : vector<1x24xf32> to vector<16x24xf32>
    %47 = arith.addf %45, %46 : vector<16x24xf32>
    %cst_29 = arith.constant dense<0xFF800000> : vector<16xf32>
    %48 = vector.multi_reduction <maximumf>, %47, %cst_29 [1] : vector<16x24xf32> to vector<16xf32>
    %49 = vector.shape_cast %48 : vector<16xf32> to vector<16x1xf32>
    %50 = vector.broadcast %49 : vector<16x1xf32> to vector<16x24xf32>
    %51 = arith.subf %47, %50 : vector<16x24xf32>
    %52 = math.exp %51 : vector<16x24xf32>
    %cst_30 = arith.constant dense<0.000000e+00> : vector<16xf32>
    %53 = vector.multi_reduction <add>, %52, %cst_30 [1] : vector<16x24xf32> to vector<16xf32>
    %54 = vector.shape_cast %53 : vector<16xf32> to vector<16x1xf32>
    %cst_31 = arith.constant dense<0.000000e+00> : vector<16x16xf32>
    %55 = tpu.matmul %52, %44, %cst_31 {dimension_numbers = #tpu.dot_dimension_numbers<[1], [0], [0], [1], [0, 0, 1, 1], [], []>, precision = #tpu.contract_precision<fp32>} : vector<16x24xf32>, vector<24x16xf32>, vector<16x16xf32> -> vector<16x16xf32>
    %cst_32 = arith.constant 1.000000e+00 : f32
    %56 = vector.broadcast %cst_32 : f32 to vector<16x1xf32>
    %57 = arith.divf %56, %54 : vector<16x1xf32>
    %58 = vector.broadcast %57 : vector<16x1xf32> to vector<16x16xf32>
    %59 = arith.mulf %55, %58 : vector<16x16xf32>
    %c16 = arith.constant 16 : index
    %c0_33 = arith.constant 0 : index
    %60 = vector.load %arg8[%c16, %c0_33] : memref<64x64xf32, #tpu.memory_space<vmem>>, vector<16x64xf32>
    %cst_34 = arith.constant dense<0.000000e+00> : vector<16x64xf32>
    %61 = tpu.matmul %59, %60, %cst_34 {dimension_numbers = #tpu.dot_dimension_numbers<[1], [0], [0], [1], [0, 0, 1, 1], [], []>, precision = #tpu.contract_precision<fp32>} : vector<16x16xf32>, vector<16x64xf32>, vector<16x64xf32> -> vector<16x64xf32>
    %62 = arith.addf %39, %61 : vector<16x64xf32>
    %63 = vector.extract_strided_slice %10 {offsets = [0, 32], sizes = [16, 16], strides = [1, 1]} : vector<16x64xf32> to vector<16x16xf32>
    %cst_35 = arith.constant 2.500000e-01 : f32
    %64 = vector.broadcast %cst_35 : f32 to vector<16x16xf32>
    %65 = arith.mulf %63, %64 : vector<16x16xf32>
    %66 = vector.extract_strided_slice %15 {offsets = [0, 32], sizes = [24, 16], strides = [1, 1]} : vector<24x128xf32> to vector<24x16xf32>
    %67 = vector.extract_strided_slice %15 {offsets = [0, 96], sizes = [24, 16], strides = [1, 1]} : vector<24x128xf32> to vector<24x16xf32>
    %cst_36 = arith.constant dense<0.000000e+00> : vector<16x24xf32>
    %68 = tpu.matmul %65, %66, %cst_36 {dimension_numbers = #tpu.dot_dimension_numbers<[1], [1], [0], [0], [0, 0, 1, 0], [], []>, precision = #tpu.contract_precision<fp32>} : vector<16x16xf32>, vector<24x16xf32>, vector<16x24xf32> -> vector<16x24xf32>
    %69 = vector.broadcast %5 : vector<1x24xf32> to vector<16x24xf32>
    %70 = arith.addf %68, %69 : vector<16x24xf32>
    %cst_37 = arith.constant dense<0xFF800000> : vector<16xf32>
    %71 = vector.multi_reduction <maximumf>, %70, %cst_37 [1] : vector<16x24xf32> to vector<16xf32>
    %72 = vector.shape_cast %71 : vector<16xf32> to vector<16x1xf32>
    %73 = vector.broadcast %72 : vector<16x1xf32> to vector<16x24xf32>
    %74 = arith.subf %70, %73 : vector<16x24xf32>
    %75 = math.exp %74 : vector<16x24xf32>
    %cst_38 = arith.constant dense<0.000000e+00> : vector<16xf32>
    %76 = vector.multi_reduction <add>, %75, %cst_38 [1] : vector<16x24xf32> to vector<16xf32>
    %77 = vector.shape_cast %76 : vector<16xf32> to vector<16x1xf32>
    %cst_39 = arith.constant dense<0.000000e+00> : vector<16x16xf32>
    %78 = tpu.matmul %75, %67, %cst_39 {dimension_numbers = #tpu.dot_dimension_numbers<[1], [0], [0], [1], [0, 0, 1, 1], [], []>, precision = #tpu.contract_precision<fp32>} : vector<16x24xf32>, vector<24x16xf32>, vector<16x16xf32> -> vector<16x16xf32>
    %cst_40 = arith.constant 1.000000e+00 : f32
    %79 = vector.broadcast %cst_40 : f32 to vector<16x1xf32>
    %80 = arith.divf %79, %77 : vector<16x1xf32>
    %81 = vector.broadcast %80 : vector<16x1xf32> to vector<16x16xf32>
    %82 = arith.mulf %78, %81 : vector<16x16xf32>
    %c32 = arith.constant 32 : index
    %c0_41 = arith.constant 0 : index
    %83 = vector.load %arg8[%c32, %c0_41] : memref<64x64xf32, #tpu.memory_space<vmem>>, vector<16x64xf32>
    %cst_42 = arith.constant dense<0.000000e+00> : vector<16x64xf32>
    %84 = tpu.matmul %82, %83, %cst_42 {dimension_numbers = #tpu.dot_dimension_numbers<[1], [0], [0], [1], [0, 0, 1, 1], [], []>, precision = #tpu.contract_precision<fp32>} : vector<16x16xf32>, vector<16x64xf32>, vector<16x64xf32> -> vector<16x64xf32>
    %85 = arith.addf %62, %84 : vector<16x64xf32>
    %86 = vector.extract_strided_slice %10 {offsets = [0, 48], sizes = [16, 16], strides = [1, 1]} : vector<16x64xf32> to vector<16x16xf32>
    %cst_43 = arith.constant 2.500000e-01 : f32
    %87 = vector.broadcast %cst_43 : f32 to vector<16x16xf32>
    %88 = arith.mulf %86, %87 : vector<16x16xf32>
    %89 = vector.extract_strided_slice %15 {offsets = [0, 48], sizes = [24, 16], strides = [1, 1]} : vector<24x128xf32> to vector<24x16xf32>
    %90 = vector.extract_strided_slice %15 {offsets = [0, 112], sizes = [24, 16], strides = [1, 1]} : vector<24x128xf32> to vector<24x16xf32>
    %cst_44 = arith.constant dense<0.000000e+00> : vector<16x24xf32>
    %91 = tpu.matmul %88, %89, %cst_44 {dimension_numbers = #tpu.dot_dimension_numbers<[1], [1], [0], [0], [0, 0, 1, 0], [], []>, precision = #tpu.contract_precision<fp32>} : vector<16x16xf32>, vector<24x16xf32>, vector<16x24xf32> -> vector<16x24xf32>
    %92 = vector.broadcast %5 : vector<1x24xf32> to vector<16x24xf32>
    %93 = arith.addf %91, %92 : vector<16x24xf32>
    %cst_45 = arith.constant dense<0xFF800000> : vector<16xf32>
    %94 = vector.multi_reduction <maximumf>, %93, %cst_45 [1] : vector<16x24xf32> to vector<16xf32>
    %95 = vector.shape_cast %94 : vector<16xf32> to vector<16x1xf32>
    %96 = vector.broadcast %95 : vector<16x1xf32> to vector<16x24xf32>
    %97 = arith.subf %93, %96 : vector<16x24xf32>
    %98 = math.exp %97 : vector<16x24xf32>
    %cst_46 = arith.constant dense<0.000000e+00> : vector<16xf32>
    %99 = vector.multi_reduction <add>, %98, %cst_46 [1] : vector<16x24xf32> to vector<16xf32>
    %100 = vector.shape_cast %99 : vector<16xf32> to vector<16x1xf32>
    %cst_47 = arith.constant dense<0.000000e+00> : vector<16x16xf32>
    %101 = tpu.matmul %98, %90, %cst_47 {dimension_numbers = #tpu.dot_dimension_numbers<[1], [0], [0], [1], [0, 0, 1, 1], [], []>, precision = #tpu.contract_precision<fp32>} : vector<16x24xf32>, vector<24x16xf32>, vector<16x16xf32> -> vector<16x16xf32>
    %cst_48 = arith.constant 1.000000e+00 : f32
    %102 = vector.broadcast %cst_48 : f32 to vector<16x1xf32>
    %103 = arith.divf %102, %100 : vector<16x1xf32>
    %104 = vector.broadcast %103 : vector<16x1xf32> to vector<16x16xf32>
    %105 = arith.mulf %101, %104 : vector<16x16xf32>
    %c48 = arith.constant 48 : index
    %c0_49 = arith.constant 0 : index
    %106 = vector.load %arg8[%c48, %c0_49] : memref<64x64xf32, #tpu.memory_space<vmem>>, vector<16x64xf32>
    %cst_50 = arith.constant dense<0.000000e+00> : vector<16x64xf32>
    %107 = tpu.matmul %105, %106, %cst_50 {dimension_numbers = #tpu.dot_dimension_numbers<[1], [0], [0], [1], [0, 0, 1, 1], [], []>, precision = #tpu.contract_precision<fp32>} : vector<16x16xf32>, vector<16x64xf32>, vector<16x64xf32> -> vector<16x64xf32>
    %108 = arith.addf %85, %107 : vector<16x64xf32>
    %c0_51 = arith.constant 0 : index
    %c0_52 = arith.constant 0 : index
    %109 = vector.load %arg9[%c0_51, %c0_52] : memref<1x64xf32, #tpu.memory_space<vmem>>, vector<1x64xf32>
    %110 = vector.broadcast %109 : vector<1x64xf32> to vector<16x64xf32>
    %111 = arith.addf %108, %110 : vector<16x64xf32>
    %c0_53 = arith.constant 0 : index
    %c0_54 = arith.constant 0 : index
    %c0_55 = arith.constant 0 : index
    %112 = vector.load %arg10[%c0_53, %c0_54, %c0_55] : memref<1x16x64xf32, #tpu.memory_space<vmem>>, vector<1x16x64xf32>
    %113 = vector.shape_cast %112 : vector<1x16x64xf32> to vector<16x64xf32>
    %114 = vector.shape_cast %111 : vector<16x64xf32> to vector<1x16x64xf32>
    tpu.vector_store %arg10[%c0_53, %c0_54, %c0_55], %114 {strides = array<i32>} : memref<1x16x64xf32, #tpu.memory_space<vmem>>, vector<1x16x64xf32>,
    return
  }
  func.func @transform_0(%arg0: i32) -> (i32, i32, i32) {
    %c0_i32 = arith.constant 0 : i32
    %c0_i32_0 = arith.constant 0 : i32
    %c0_i32_1 = arith.constant 0 : i32
    return %arg0, %c0_i32, %c0_i32_0 : i32, i32, i32
  }
  func.func @transform_1(%arg0: i32) -> (i32, i32, i32) {
    %c0_i32 = arith.constant 0 : i32
    %c0_i32_0 = arith.constant 0 : i32
    %c0_i32_1 = arith.constant 0 : i32
    return %arg0, %c0_i32, %c0_i32_0 : i32, i32, i32
  }
  func.func @transform_2(%arg0: i32) -> (i32, i32, i32) {
    %c0_i32 = arith.constant 0 : i32
    %c0_i32_0 = arith.constant 0 : i32
    %c0_i32_1 = arith.constant 0 : i32
    return %arg0, %c0_i32, %c0_i32_0 : i32, i32, i32
  }
  func.func @transform_3(%arg0: i32) -> (i32, i32) {
    %c0_i32 = arith.constant 0 : i32
    %c0_i32_0 = arith.constant 0 : i32
    %c0_i32_1 = arith.constant 0 : i32
    return %c0_i32, %c0_i32_0 : i32, i32
  }
  func.func @transform_4(%arg0: i32) -> (i32, i32) {
    %c0_i32 = arith.constant 0 : i32
    %c0_i32_0 = arith.constant 0 : i32
    %c0_i32_1 = arith.constant 0 : i32
    return %c0_i32, %c0_i32_0 : i32, i32
  }
  func.func @transform_5(%arg0: i32) -> (i32, i32) {
    %c0_i32 = arith.constant 0 : i32
    %c0_i32_0 = arith.constant 0 : i32
    %c0_i32_1 = arith.constant 0 : i32
    return %c0_i32, %c0_i32_0 : i32, i32
  }
  func.func @transform_6(%arg0: i32) -> (i32, i32) {
    %c0_i32 = arith.constant 0 : i32
    %c0_i32_0 = arith.constant 0 : i32
    %c0_i32_1 = arith.constant 0 : i32
    return %c0_i32, %c0_i32_0 : i32, i32
  }
  func.func @transform_7(%arg0: i32) -> (i32, i32) {
    %c0_i32 = arith.constant 0 : i32
    %c0_i32_0 = arith.constant 0 : i32
    %c0_i32_1 = arith.constant 0 : i32
    return %c0_i32, %c0_i32_0 : i32, i32
  }
  func.func @transform_8(%arg0: i32) -> (i32, i32) {
    %c0_i32 = arith.constant 0 : i32
    %c0_i32_0 = arith.constant 0 : i32
    %c0_i32_1 = arith.constant 0 : i32
    return %c0_i32, %c0_i32_0 : i32, i32
  }
  func.func @transform_9(%arg0: i32) -> (i32, i32, i32) {
    %c0_i32 = arith.constant 0 : i32
    %c0_i32_0 = arith.constant 0 : i32
    %c0_i32_1 = arith.constant 0 : i32
    return %arg0, %c0_i32, %c0_i32_0 : i32, i32, i32
  }
}

</mosaic_0001>

<bundles_post_ra>
// kernel: tpu_custom_call.1
= control target key start
LH: loop header
LB: loop body
LE: loop exit
PB: predicated region body
PF: predicated region fallthrough
CT: control target
= control target key end

     0   :  { %s11784_s0 = inlined_call_operand.hbm [shape: f32[2,16,64], index: 0, kind: input, shape index: {}]   ;;  %s11785_s1 = inlined_call_operand.hbm [shape: f32[2,24,64], index: 1, kind: input, shape index: {}]   ;;  %s11786_s2 = inlined_call_operand.vmem [shape: f32[2,1,24], index: 2, kind: input, shape index: {}]   ;;  %s11787_s3 = inlined_call_operand.hbm [shape: f32[64,64], index: 3, kind: input, shape index: {}]   ;;  %s11788_s4 = inlined_call_operand.vmem [shape: f32[1,64], index: 4, kind: input, shape index: {}]   ;;  %s11789_s5 = inlined_call_operand.hbm [shape: f32[64,128], index: 5, kind: input, shape index: {}]   ;;  %s11790_s6 = inlined_call_operand.vmem [shape: f32[1,128], index: 6, kind: input, shape index: {}]   ;;  %s11791_s7 = inlined_call_operand.hbm [shape: f32[64,64], index: 7, kind: input, shape index: {}]   ;;  %s11792_s8 = inlined_call_operand.vmem [shape: f32[1,64], index: 8, kind: input, shape index: {}]   ;;  %s11793_s9 = inlined_call_operand.hbm [shape: f32[2,16,64], index: 9, kind: output, shape index: {}]  }
   0x1   :  { %11808 = sst [smem:[#allocation19_spill]] %s11784_s0 }
   0x2   :  { %11809 = sst [smem:[#allocation20_spill]] %s11787_s3 }
   0x3   :  { %11810 = sst [smem:[#allocation21_spill]] %s11789_s5 }
   0x4   :  { %11811 = sst [smem:[#allocation22_spill]] %s11791_s7 }
   0x5   :  { %11812 = sst [smem:[#allocation23_spill]] %s11793_s9 }
   0x6   :  { %14 = vsyncpa [#allocation3], 0 }
   0x7   :  { %16 = vsyncpa [#allocation3 + $0x1], 0 }
   0x8   :  { %17 = vsyncpa [#allocation6], 0 }
   0x9   :  { %19 = vsyncpa [#allocation6 + $0x1], 0 }
   0xa   :  { %20 = vsyncpa [#allocation9], 0 }
   0xb   :  { %21 = vsyncpa [#allocation4], 0 }
   0xc   :  { %23 = vsyncpa [#allocation4 + $0x1], 0  ;;  %s10680_s30 = smov 0   ;;  %s10682_s10 = smov 0  }
   0xd   :  { %s10684_s11 = smov 0   ;;  %s10686_s12 = smov 0  }
   0xe LB: > { %11813 = sst [smem:[#allocation17_spill]] %s10596_s30  ;;  %s10701_s13 = sadd.s32 4294967295, %s10608_s12   ;;  %s10608_s12 = sphi %s10686_s12, %s11850_s12   ;;  %s10604_s11 = sphi %s10684_s11, %s11849_s11   ;;  %s10600_s10 = sphi %s10682_s10, %s11848_s10   ;;  %s10596_s30 = sphi %s10680_s30, %s11847_s30  }
   0xf   : > { %s8266_s14 = sadd.s32 4294967294, %s10608_s12   ;;  %p49_p0 = scmp.ne.s32.totalorder %s10600_s10, %s10596_s30 }
  0x10   : > { %p11794_p1 = scmp.eq.s32.totalorder %s10701_s13, 0  ;;  %p257_p3 = scmp.eq.s32.totalorder %s8266_s14, 1 }
  0x11   : > { %p8267_p5 = scmp.ge.s32.totalorder %s10608_s12, 1  ;;  %p264_p7 = scmp.lt.s32.totalorder %s10608_s12, 3 }
  0x12   : > { %p10710_p4 = por %p11794_p1, %p49_p0  ;;  %p10715_p6 = por %p257_p3, %p49_p0 }
  0x13   : > { %p10720_p8 = pnand %p8267_p5, %p264_p7  ;;  %s10610_s18 = smov [#allocation7]  }
  0x14   : > { %s11814_s15 = scalar_select %p10710_p4, 1, 0 }
  0x15   : > { %s11815_s16 = scalar_select %p10715_p6, 1, 0 }
  0x16   : > { %s11817_s17 = scalar_select %p10720_p8, 1, 0 }
  0x17   : > { %11816 = sst [smem:[#allocation18_spill]] %s11815_s16  ;;  %s276_s19 = sshll.u32 %s10610_s18, 4  ;;  %s10724_s19 = int_to_ptr.vmem [resolvable:$true] %s276_s19 }
  0x18   : > { %p10275_p9 = pneg %p10720_p8  ;;  %s10611_s21 = smov [#allocation8]  }
  0x19   : > { %s292_s22 = sshll.u32 %s10611_s21, 4  ;;  %s10612_s23 = smov [#allocation10]   ;;  %s10735_s22 = int_to_ptr.vmem [resolvable:$true] %s292_s22 }
  0x1a   : > { %p10731_p11 = pnand %p10275_p9, %p11794_p1  ;;  %s10737_s24 = sshll.u32 %s10612_s23, 4  ;;  %s309_s24 = int_to_ptr.vmem [resolvable:$true] %s10737_s24 }
  0x1b   : > { %s11819_s3 = sld [smem:[#allocation20_spill]] }
  0x1c   : > { %p10747_p13 = pneg %p10731_p11 }
  0x21   : > { %s10386_s27 = scalar_lea.hbm %s11819_s3, 1024 }
  0x22   : > { %p10387_p12 = scmp.ne.s32.totalorder %s11819_s3, %s10386_s27  ;;  %p10393_p5 = scmp.lt.u32.totalorder %s10386_s27, %s11819_s3 }
  0x24   : > { %p10389_p0 = pnand %p10747_p13, %p10387_p12 }
  0x26   : > { %p10390_p3 = pneg %p10389_p0 }
  0x28   : > { %p10395_p7 = pnand %p10393_p5, %p10390_p3 }
  0x2a   : > { %10398 = shalt.err (!%p10395_p7)
}
  0x2b   : > { %s10399_s23 = scalar_lea.vmem %s10724_s19, 1024  ;;  %p10407_p2 = scmp.lt.s32.totalorder %s10724_s19, %s10724_s19 }
  0x2c   : > { %p10400_p9 = scmp.ne.s32.totalorder %s10724_s19, %s10399_s23  ;;  %p10408_p6 = scmp.lt.s32.totalorder %s10399_s23, %s10399_s23 }
  0x2e   : > { %p10402_p10 = pnand %p10400_p9, %p10747_p13  ;;  %p10409_p12 = por %p10408_p6, %p10407_p2 }
  0x30   : > { %p10403_p1 = pneg %p10402_p10 }
  0x32   : > { %p10410_p0 = pnand %p10409_p12, %p10403_p1 }
  0x34   : > { %10413 = shalt.err (!%p10410_p0)
}
  0x35   : > { %s11800_s25 = smov 128   ;;  %s10614_s26 = smov 8  }
  0x36   : > { %10278 = dma.hbm_to_vmem [thread:$0]  (!%p10731_p11), %s11819_s3, 1024, %s10724_s19, [#allocation6], %s11800_s25, %s11800_s25, %s10614_s26  }
  0x37   : > { %s11821_s5 = sld [smem:[#allocation21_spill]] }
  0x3d   : > { %s10414_s21 = scalar_lea.hbm %s11821_s5, 1024 }
  0x3e   : > { %p10415_p1 = scmp.ne.s32.totalorder %s11821_s5, %s10414_s21  ;;  %p10421_p10 = scmp.lt.u32.totalorder %s10414_s21, %s11821_s5 }
  0x40   : > { %p10417_p2 = pnand %p10415_p1, %p10747_p13 }
  0x42   : > { %p10418_p6 = pneg %p10417_p2 }
  0x44   : > { %p10423_p3 = pnand %p10421_p10, %p10418_p6 }
  0x46   : > { %10426 = shalt.err (!%p10423_p3)
}
  0x47   : > { %s10427_s19 = scalar_lea.vmem %s10735_s22, 1024  ;;  %p10435_p12 = scmp.lt.s32.totalorder %s10735_s22, %s10735_s22 }
  0x48   : > { %p10428_p5 = scmp.ne.s32.totalorder %s10735_s22, %s10427_s19  ;;  %p10436_p0 = scmp.lt.s32.totalorder %s10427_s19, %s10427_s19 }
  0x4a   : > { %p10430_p7 = pnand %p10428_p5, %p10747_p13  ;;  %p10437_p1 = por %p10436_p0, %p10435_p12 }
  0x4c   : > { %p10431_p9 = pneg %p10430_p7 }
  0x4e   : > { %p10438_p2 = pnand %p10437_p1, %p10431_p9 }
  0x50   : > { %10441 = shalt.err (!%p10438_p2)
}
  0x51   : > { %10281 = dma.hbm_to_vmem [thread:$0]  (!%p10731_p11), %s11821_s5, 1024, %s10735_s22, [#allocation9], %s11800_s25, %s11800_s25, %s10614_s26  }
  0x52   : > { %s11822_s7 = sld [smem:[#allocation22_spill]] }
  0x58   : > { %s10442_s28 = scalar_lea.hbm %s11822_s7, 1024 }
  0x59   : > { %p10443_p6 = scmp.ne.s32.totalorder %s11822_s7, %s10442_s28  ;;  %p10449_p5 = scmp.lt.u32.totalorder %s10442_s28, %s11822_s7 }
  0x5b   : > { %p10445_p10 = pnand %p10443_p6, %p10747_p13 }
  0x5d   : > { %p10446_p3 = pneg %p10445_p10 }
  0x5f   : > { %p10451_p7 = pnand %p10449_p5, %p10446_p3 }
  0x61   : > { %10454 = shalt.err (!%p10451_p7)
}
  0x62   : > { %s10455_s19 = scalar_lea.vmem %s309_s24, 1024  ;;  %p10463_p1 = scmp.lt.s32.totalorder %s309_s24, %s309_s24 }
  0x63   : > { %p10456_p9 = scmp.ne.s32.totalorder %s309_s24, %s10455_s19  ;;  %p10464_p2 = scmp.lt.s32.totalorder %s10455_s19, %s10455_s19 }
  0x65   : > { %p10458_p12 = pnand %p10456_p9, %p10747_p13  ;;  %p10465_p4 = por %p10464_p2, %p10463_p1 }
  0x67   : > { %p10459_p0 = pneg %p10458_p12 }
  0x69   : > { %p10466_p8 = pnand %p10465_p4, %p10459_p0 }
  0x6b   : > { %10469 = shalt.err (!%p10466_p8)
}
  0x6c   : > { %10284 = dma.hbm_to_vmem [thread:$0]  (!%p10731_p11), %s11822_s7, 1024, %s309_s24, [#allocation9], %s11800_s25, %s11800_s25, %s10614_s26  }
  0x6d   : > { %s10820_s14 = sadd.s32 1, %s10608_s12   ;;  %s36_s30 = sadd.s32 1, %s10604_s11 }
  0x6e   : > { %s33_s20 = ssub.s32 %s10608_s12, %s10820_s14  ;;  %p43_p8 = scmp.ne.s32.totalorder %s10604_s11, %s10600_s10 }
  0x6f   : > { %p34_p4 = scmp.eq.s32.totalorder %s33_s20, 0  ;;  %p44_p13 = scmp.eq.s32.totalorder %s10608_s12, 0 }
  0x70   : > { %p10299_p6 = scmp.lt.s32.totalorder %s10608_s12, 2  ;;  %p11823_p3 = scmp.eq.s32.totalorder %s10701_s13, 1 }
  0x71   : > { %s10830_s16 = scalar_select %p34_p4, %s10604_s11, %s36_s30  }
  0x72   : > { %p45_p10 = por %p44_p13, %p43_p8  ;;  %p10834_p5 = por %p11823_p3, %p43_p8 }
  0x73   : > { %s10839_s28 = sand.u32 1, %s10604_s11   ;;  %s8291_s24 = sshll.u32 %s10608_s12, 8 }
  0x74   : > { %s8272_s29 = sshll.u32 %s10839_s28, 4  ;;  %s11825_s0 = sld [smem:[#allocation19_spill]] }
  0x75   : > { %s329_s19 = scalar_lea.vmem [#allocation2], %s8272_s29  ;;  %p10848_p11 = pnand %p10299_p6, %p45_p10 }
  0x76   : > { %s336_s22 = sshll.u32 %s329_s19, 4  ;;  %s326_s30 = scalar_lea.sflag [#allocation3], %s10839_s28  ;;  %s10852_s22 = int_to_ptr.vmem [resolvable:$true] %s336_s22 }
  0x77   : > { %p10472_p9 = pneg %p10848_p11 }
  0x7a   : > { %s10846_s23 = scalar_lea.hbm %s11825_s0, %s8291_s24  ;;  %s10475_s18 = scalar_lea.hbm %s11825_s0, 512 }
  0x7b   : > { %s10470_s25 = scalar_lea.hbm %s10846_s23, 256  ;;  %p10476_p1 = scmp.lt.u32.totalorder %s10846_s23, %s11825_s0 }
  0x7c   : > { %p10471_p7 = scmp.ne.s32.totalorder %s10846_s23, %s10470_s25  ;;  %p10477_p2 = scmp.lt.u32.totalorder %s10475_s18, %s10470_s25 }
  0x7d   : > { %p10479_p8 = scmp.lt.u32.totalorder %s10470_s25, %s10846_s23 }
  0x7e   : > { %p10473_p12 = pnand %p10472_p9, %p10471_p7  ;;  %p10478_p4 = por %p10477_p2, %p10476_p1 }
  0x80   : > { %p10474_p0 = pneg %p10473_p12  ;;  %p10480_p13 = por %p10479_p8, %p10478_p4 }
  0x82   : > { %p10481_p6 = pnand %p10480_p13, %p10474_p0 }
  0x84   : > { %10484 = shalt.err (!%p10481_p6)
}
  0x85   : > { %s10485_s20 = scalar_lea.vmem %s10852_s22, 256  ;;  %s10615_s24 = smov [#allocation2]  }
  0x86   : > { %p10486_p10 = scmp.ne.s32.totalorder %s10852_s22, %s10485_s20  ;;  %s10490_s29 = sshll.u32 %s10615_s24, 4  ;;  %s10491_s29 = int_to_ptr.vmem [resolvable:$false] %s10490_s29 }
  0x87   : > { %s10492_s21 = scalar_lea.vmem %s10491_s29, 512  ;;  %p10493_p12 = scmp.lt.s32.totalorder %s10852_s22, %s10491_s29 }
  0x88   : > { %p10488_p3 = pnand %p10486_p10, %p10472_p9  ;;  %p10494_p1 = scmp.lt.s32.totalorder %s10492_s21, %s10485_s20 }
  0x8a   : > { %p10489_p7 = pneg %p10488_p3  ;;  %p10495_p2 = por %p10494_p1, %p10493_p12 }
  0x8c   : > { %p10496_p4 = pnand %p10495_p2, %p10489_p7 }
  0x8e   : > { %10499 = shalt.err (!%p10496_p4)
}
  0x8f   : > { %s11827_s25 = smov 128   ;;  %s10254_s18 = smul.u32 24, %s10839_s28 }
  0x90   : > { %10288 = dma.hbm_to_vmem [thread:$0]  (!%p10848_p11), %s10846_s23, 256, %s10852_s22, %s326_s30, %s11827_s25, %s11827_s25, %s10614_s26  }
  0x91   : > { %s10255_s19 = smul.u32 384, %s10608_s12  ;;  %s350_s21 = scalar_lea.vmem [#allocation5], %s10254_s18 }
  0x92   : > { %s357_s0 = sshll.u32 %s350_s21, 4  ;;  %s11828_s3 = sand.u32 1, %s10608_s12   ;;  %s10893_s0 = int_to_ptr.vmem [resolvable:$true] %s357_s0 }
  0x93   : > { %s10891_s29 = scalar_lea.hbm %s11785_s1, %s10255_s19  ;;  %s10897_s5 = scalar_lea.sflag [#allocation6], %s11828_s3 }
  0x94   : > { %s10500_s7 = scalar_lea.hbm %s10891_s29, 384  ;;  %s10505_s22 = scalar_lea.hbm %s11785_s1, 768 }
  0x95   : > { %p10501_p0 = scmp.ne.s32.totalorder %s10891_s29, %s10500_s7  ;;  %p10506_p6 = scmp.lt.u32.totalorder %s10891_s29, %s11785_s1 }
  0x96   : > { %p10507_p10 = scmp.lt.u32.totalorder %s10505_s22, %s10500_s7  ;;  %p10509_p7 = scmp.lt.u32.totalorder %s10500_s7, %s10891_s29 }
  0x97   : > { %p10503_p8 = pnand %p10501_p0, %p10472_p9 }
  0x98   : > { %p10508_p3 = por %p10507_p10, %p10506_p6 }
  0x99   : > { %p10504_p13 = pneg %p10503_p8 }
  0x9a   : > { %p10510_p12 = por %p10509_p7, %p10508_p3 }
  0x9c   : > { %p10511_p1 = pnand %p10510_p12, %p10504_p13 }
  0x9e   : > { %10514 = shalt.err (!%p10511_p1)
}
  0x9f   : > { %s10515_s3 = scalar_lea.vmem %s10893_s0, 384  ;;  %s10616_s18 = smov [#allocation5]  }
  0xa0   : > { %p10516_p2 = scmp.ne.s32.totalorder %s10893_s0, %s10515_s3  ;;  %s10520_s20 = sshll.u32 %s10616_s18, 4  ;;  %s10521_s20 = int_to_ptr.vmem [resolvable:$false] %s10520_s20 }
  0xa1   : > { %s10522_s24 = scalar_lea.vmem %s10521_s20, 768  ;;  %p10523_p8 = scmp.lt.s32.totalorder %s10893_s0, %s10521_s20 }
  0xa2   : > { %p10518_p4 = pnand %p10516_p2, %p10472_p9  ;;  %p10524_p6 = scmp.lt.s32.totalorder %s10522_s24, %s10515_s3 }
  0xa4   : > { %p10519_p0 = pneg %p10518_p4  ;;  %p10525_p10 = por %p10524_p6, %p10523_p8 }
  0xa6   : > { %p10526_p3 = pnand %p10525_p10, %p10519_p0 }
  0xa8   : > { %10529 = shalt.err (!%p10526_p3)
}
  0xa9   : > { %10291 = dma.hbm_to_vmem [thread:$0]  (!%p10848_p11), %s10891_s29, 384, %s10893_s0, %s10897_s5, %s11827_s25, %s11827_s25, %s10614_s26  }
  0xaa   : > { %p11829_p9 = scmp.ne.s32.totalorder %s11817_s17, 0 }
  0xab   : > { %s10929_s7 = sand.u32 (!%p11829_p9), 1, %s10600_s10   ;;  %p11830_p13 = scmp.ne.s32.totalorder (!%p11829_p9), %s11814_s15, 0 }
  0xac   : > { %375 = sbr.rel (%p11829_p9) target bundleno = 2688 (0xa80), region = 56  ;;  %s8277_s21 = sshll.u32 (!%p11829_p9), %s10929_s7, 4 }
  0xad   : > { %s378_s28 = scalar_lea.sflag (!%p11829_p9), [#allocation3], %s10929_s7  ;;  %s10935_s9 = scalar_lea.vmem (!%p11829_p9), [#allocation2], %s8277_s21 }
  0xb3   : > { %10575 = dma.done.wait (%p11830_p13), %s378_s28, 256  }
  0xb4   : > { %10577 = vsyncadd (%p11830_p13), %s378_s28, 4294967040  ;;  %s386_s0 = sand.u32 1, %s10701_s13   ;;  %s10256_s5 = smul.u32 24, %s10929_s7 }
  0xb5   : > { %s387_s17 = scalar_lea.sflag [#allocation6], %s386_s0 }
  0xb6   : > { %s10943_s26 = scalar_lea.vmem [#allocation5], %s10256_s5 }
  0xb7   : > { %10579 = dma.done.wait (%p11830_p13), %s387_s17, 384  }
  0xb8   : > { %10581 = vsyncadd (%p11830_p13), %s387_s17, 4294966912  ;;  %p11831_p11 = scmp.eq.s32.totalorder %s10701_s13, 0 }
  0xba   : > { %10583 = dma.done.wait (%p11831_p11), [#allocation6], 1024   ;;  %p11832_p7 = pmov %p11831_p11 }
  0xbc   : > { %10585 = vsyncadd (%p11832_p7), [#allocation6], 4294966272  ;;  %p11833_p12 = pmov %p11832_p7 }
  0xbd   : > { %p11834_p1 = pmov %p11832_p7 }
  0xbe   : > { %10587 = dma.done.wait (%p11833_p12), [#allocation9], 2048  }
  0xbf   : > { %10589 = vsyncadd (%p11834_p1), [#allocation9], 4294965248  ;;  %v10617_v0 = vmov 0.0|0.0   ;;  %vm10618_vm0 = vmmov 0   ;;  %v10619_v1 = vmov 0.0   ;;  %v454_v2 = vld [vmem:[#allocation7] sm:$0xff] }
  0xc0   : > { %9715 = vmatprep.subr.bf16.mxu1 %v10617_v0  ;;  %8885 = vmatprep.mubr.msk.f32.mxu1 %vm10618_vm0, %v10619_v1  ;;  %v455_v3 = vld [vmem:[#allocation7 + $0x8] sm:$0xff]  ;;  %v1056_v4 = vld [vmem:[#allocation8] sm:$0xff]  ;;  %vm469_vm1 = vcmask 523264   ;;  %v477_v5 = vand.u32 4294901760, %v454_v2  ;;  %v10960_v9 = vld [vmem:[#allocation7 + $0x10] sm:$0xff]  ;;  %vm1711_vm2 = vcmask 130048  }
  0xc1   : > { %v480_v6 = vand.u32 4294901760, %v455_v3  ;;  %v1057_v7 = vld [vmem:[#allocation8 + $0x8] sm:$0xff]  ;;  %v1081_v8 = vand.u32 4294901760, %v1056_v4  ;;  %v10962_v10 = vld [vmem:[#allocation7 + $0x18] sm:$0xff]  ;;  %v483_v12 = vand.u32 4294901760, %v10960_v9  ;;  %v1058_v14 = vld [vmem:[#allocation8 + $0x10] sm:$0xff] }
  0xc2   : > { %v1084_v11 = vand.u32 4294901760, %v1057_v7  ;;  %v486_v13 = vand.u32 4294901760, %v10962_v10  ;;  %v1059_v15 = vld [vmem:[#allocation8 + $0x18] sm:$0xff]  ;;  %v10966_v16 = vld [vmem:[#allocation7 + $0x20] sm:$0xff]  ;;  %v1087_v19 = vand.u32 4294901760, %v1058_v14  ;;  %v10972_v21 = vld [vmem:[#allocation7 + $0x28] sm:$0xff]  ;;  %v11035_v55 = vsub.f32 %v454_v2, %v477_v5 }
  0xc3   : > { %v10968_v17 = vpack.c.bf16 %v480_v6, %v477_v5  ;;  %v10970_v18 = vsub.f32 %v1056_v4, %v1081_v8  ;;  %v1090_v20 = vand.u32 4294901760, %v1059_v15  ;;  %v1060_v22 = vld [vmem:[#allocation8 + $0x20] sm:$0xff]  ;;  %v1061_v23 = vld [vmem:[#allocation8 + $0x28] sm:$0xff]  ;;  %v489_v27 = vand.u32 4294901760, %v10966_v16  ;;  %v10985_v28 = vld [vmem:[#allocation7 + $0x30] sm:$0xff]  ;;  %s10620_s22 = smov 64  }
  0xc4   : > { %v10974_v24 = vpack.c.bf16 %v1084_v11, %v1081_v8  ;;  %v10976_v25 = vsub.f32 %v1057_v7, %v1084_v11  ;;  %v10982_v26 = vpack.c.bf16 %v486_v13, %v483_v12  ;;  %v10987_v29 = vld [vmem:[#allocation7 + $0x38] sm:$0xff]  ;;  %v1062_v30 = vld [vmem:[#allocation8 + $0x30] sm:$0xff]  ;;  %v10992_v32 = vsub.f32 %v1058_v14, %v1087_v19  ;;  %s10621_s30 = smov 112   ;;  %s10622_s19 = smov 96  }
  0xc5   : > { %9620 = vmatprep.subr.bf16.mxu0 %v10968_v17  ;;  %v10990_v31 = vpack.c.bf16 %v1090_v20, %v1087_v19  ;;  %v10994_v33 = vsub.f32 %v1059_v15, %v1090_v20  ;;  %v492_v34 = vand.u32 4294901760, %v10972_v21  ;;  %v1063_v35 = vld [vmem:[#allocation8 + $0x38] sm:$0xff]  ;;  %v448_v36 = vld [vmem:[%s10935_s9] sm:$0xff]  ;;  %v1093_v37 = vand.u32 4294901760, %v1060_v22  ;;  %p445_p2 = scmp.lt.s32.totalorder %s10701_s13, 1  ;;  %s10623_s28 = smov 48  }
  0xc6   : > { %9717 = vmatpush3.bf16.msra.mxu1 %v10974_v24  ;;  %9622 = vmatpush3.bf16.msra.mxu0 %v10968_v17  ;;  %v1096_v38 = vand.u32 4294901760, %v1061_v23  ;;  %v495_v39 = vand.u32 4294901760, %v10985_v28  ;;  %v498_v40 = vand.u32 4294901760, %v10987_v29  ;;  %v1099_v42 = vand.u32 4294901760, %v1062_v30  ;;  %v450_v45 = vld [vmem:[%s10943_s26] sm:$0xff]  ;;  %s10625_s0 = smov 32  }
  0xc7   : > { %9718 = vmatprep.subr.bf16.mxu1 %v10617_v0  ;;  %9624 = vmatprep.subr.bf16.mxu0 %v10982_v26  ;;  %v11008_v41 = vpack.c.bf16 %v492_v34, %v489_v27  ;;  %v1102_v43 = vand.u32 4294901760, %v1063_v35  ;;  %v471_v44 = vsel %vm469_vm1, %v448_v36, 0  ;;  %v11014_v47 = vsub.f32 %v1060_v22, %v1093_v37  ;;  %v449_v50 = vld [vmem:[%s10935_s9 + $0x8] sm:$0xff]  ;;  %s446_s3 = scalar_select %p445_p2, %s10701_s13, 1 }
  0xc8   : > { %v11012_v46 = vpack.c.bf16 %v1096_v38, %v1093_v37  ;;  %v11016_v48 = vsub.f32 %v1061_v23, %v1096_v38  ;;  %v11022_v49 = vpack.c.bf16 %v498_v40, %v495_v39  ;;  %v11027_v52 = vsub.f32 %v1062_v30, %v1099_v42  ;;  %s10624_s9 = smov 80   ;;  %s10626_s5 = smov 16  }
  0xc9   : > { %v11025_v51 = vpack.c.bf16 %v1102_v43, %v1099_v42  ;;  %v11029_v53 = vsub.f32 %v1063_v35, %v1102_v43  ;;  %v11031_v54 = vand.u32 4294901760, %v471_v44  ;;  %v11037_v56 = vsub.f32 %v455_v3, %v480_v6  ;;  %s11412_s24 = scalar_lea.vmem %s11786_s2, %s446_s3  ;;  %s444_s17 = scalar_lea.vmem [#allocation11], %s8277_s21 }
  0xca   : > { %9720 = vmatpush3.bf16.msra.mxu1 %v10990_v31  ;;  %9626 = vmatpush3.bf16.msra.mxu0 %v10982_v26  ;;  %v1072_v57 = vsel %vm469_vm1, %v450_v45, 0  ;;  %v1186_v58 = vand.u32 4294901760, %v10970_v18  ;;  %v1193_v61 = vand.u32 4294901760, %v10976_v25  ;;  %v474_v62 = vsel %vm469_vm1, %v449_v50, 0  ;;  %v451_v50 = vld [vmem:[%s10943_s26 + $0x8] sm:$0xff]  ;;  %s8292_s29 = sshll.u32 %s10701_s13, 8 }
  0xcb   : > { %9721 = vmatprep.subr.bf16.mxu1 %v10617_v0  ;;  %9628 = vmatprep.subr.bf16.mxu0 %v11008_v41  ;;  %v11044_v59 = vsub.f32 %v471_v44, %v11031_v54  ;;  %v11046_v60 = vand.u32 4294901760, %v1072_v57  ;;  %v572_v63 = vand.u32 4294901760, %v11035_v55  ;;  %v579_v2 = vand.u32 4294901760, %v11037_v56  ;;  %s8120_s21 = scalar_lea.sflag [#allocation4], %s10929_s7  ;;  %s10627_s18 = smov [#allocation11]  }
  0xcc   : > { %v1187_v3 = vsub.f32 %v10970_v18, %v1186_v58  ;;  %v11055_v4 = vand.u32 4294901760, %v474_v62  ;;  %v1194_v7 = vsub.f32 %v10976_v25, %v1193_v61  ;;  %v11067_v8 = vsub.f32 %v10960_v9, %v483_v12  ;;  %s10534_s20 = sshll.u32 %s10627_s18, 4  ;;  %s10535_s20 = int_to_ptr.vmem [resolvable:$false] %s10534_s20 }
  0xcd   : > { %v551_v5 = vand.u32 4294901760, %v11044_v59  ;;  %v11059_v6 = vsub.f32 %v1072_v57, %v11046_v60  ;;  %v573_v11 = vsub.f32 %v11035_v55, %v572_v63  ;;  %v580_v14 = vsub.f32 %v11037_v56, %v579_v2 }
  0xce   : > { %9723 = vmatpush3.bf16.msra.mxu1 %v11012_v46  ;;  %9630 = vmatpush3.bf16.msra.mxu0 %v11008_v41  ;;  %v1188_v15 = vand.u32 4294901760, %v1187_v3  ;;  %v11078_v19 = vsub.f32 %v474_v62, %v11055_v4  ;;  %v1195_v20 = vand.u32 4294901760, %v1194_v7  ;;  %v586_v22 = vand.u32 4294901760, %v11067_v8 }
  0xcf   : > { %9724 = vmatprep.subr.bf16.mxu1 %v10617_v0  ;;  %9632 = vmatprep.subr.bf16.mxu0 %v11022_v49  ;;  %v552_v9 = vsub.f32 %v11044_v59, %v551_v5  ;;  %v1155_v12 = vand.u32 4294901760, %v11059_v6  ;;  %v574_v23 = vand.u32 4294901760, %v573_v11  ;;  %v581_v30 = vand.u32 4294901760, %v580_v14 }
  0xd0   : > { %v561_v35 = vand.u32 4294901760, %v11078_v19  ;;  %v11091_v36 = vsub.f32 %v10962_v10, %v486_v13  ;;  %v9728_v42 = vpack.c.bf16 %v1195_v20, %v1188_v15  ;;  %v587_v43 = vsub.f32 %v11067_v8, %v586_v22 }
  0xd1   : > { %v553_v37 = vand.u32 4294901760, %v552_v9  ;;  %v1156_v38 = vsub.f32 %v11059_v6, %v1155_v12  ;;  %v9635_v44 = vpack.c.bf16 %v581_v30, %v574_v23  ;;  %v1200_v45 = vand.u32 4294901760, %v10992_v32 }
  0xd2   : > { %9726 = vmatpush3.bf16.msra.mxu1 %v11025_v51  ;;  %9634 = vmatpush3.bf16.msra.mxu0 %v11022_v49  ;;  %v562_v10 = vsub.f32 %v11078_v19, %v561_v35  ;;  %v593_v13 = vand.u32 4294901760, %v11091_v36  ;;  %v588_v62 = vand.u32 4294901760, %v587_v43  ;;  %v11803_v3 = vand.u32 4294901760, %v10994_v33 }
  0xd3   : > { %9727 = vmatprep.subr.bf16.mxu1 %v10617_v0  ;;  %8771 = vmatprep.mubr.f32.mxu0 %v553_v37  ;;  %v1157_v57 = vand.u32 4294901760, %v1156_v38  ;;  %v11112_v7 = vsub.f32 %v10966_v16, %v489_v27  ;;  %v1201_v15 = vsub.f32 %v10992_v32, %v1200_v45  ;;  %v11123_v9 = vsub.f32 %v10972_v21, %v492_v34 }
  0xd4   : > { %9636 = vmatprep.subr.bf16.mxu0 %v9635_v44  ;;  %v563_v11 = vand.u32 4294901760, %v562_v10  ;;  %v594_v14 = vsub.f32 %v11091_v36, %v593_v13  ;;  %v1208_v16 = vsub.f32 %v10994_v33, %v11803_v3  ;;  %v1075_v20 = vsel %vm469_vm1, %v451_v50, 0 }
  0xd5   : > { %8886 = vmatmul.mubr.f32.vlgmr.msra.gmra.mrb[0].mxu1 %v1157_v57  ;;  %v600_v27 = vand.u32 4294901760, %v11112_v7  ;;  %v11802_v23 = vand.u32 4294901760, %v11014_v47  ;;  %v1202_v37 = vand.u32 4294901760, %v1201_v15  ;;  %v607_v38 = vand.u32 4294901760, %v11123_v9 }
  0xd6   : > { %9729 = vmatpush3.bf16.msra.mxu1 %v9728_v42  ;;  %8772 = vmatmul.mubr.f32.vlgmr.msra.gmra.mrb[0].mxu0 %v563_v11  ;;  %v595_v30 = vand.u32 4294901760, %v594_v14  ;;  %v11132_v21 = vand.u32 4294901760, %v1075_v20  ;;  %v1209_v34 = vand.u32 4294901760, %v1208_v16  ;;  %v11804_v10 = vand.u32 4294901760, %v11016_v48  ;;  %v452_v14 = vld [vmem:[%s10943_s26 + $0x10] sm:$0xff]  ;;  %s8133_s26 = sshll.u32 %s444_s17, 4  ;;  %s11733_s26 = int_to_ptr.vmem [resolvable:$true] %s8133_s26 }
  0xd7   : > { %9638 = vmatpush3.bf16.msra.mxu0 %v9635_v44  ;;  %9730 = vmatprep.subr.bf16.mxu1 %v10617_v0  ;;  %v601_v43 = vsub.f32 %v11112_v7, %v600_v27  ;;  %v1215_v42 = vsub.f32 %v11014_v47, %v11802_v23  ;;  %v608_v44 = vsub.f32 %v11123_v9, %v607_v38  ;;  %vm2242_vm3 = vcmask 195584   ;;  %s10530_s13 = scalar_lea.vmem %s11733_s26, 256  ;;  %p10537_p6 = scmp.lt.s32.totalorder %s11733_s26, %s10535_s20 }
  0xd8   : > { %v9639_v50 = vpack.c.bf16 %v595_v30, %v588_v62  ;;  %8888 = vmatprep.mubr.msk.f32.mxu1 %vm10618_vm0, %v10619_v1  ;;  %v11148_v57 = vsub.f32 %v1075_v20, %v11132_v21  ;;  %v11153_v11 = vsub.f32 %v10985_v28, %v495_v39  ;;  %v9731_v15 = vpack.c.bf16 %v1209_v34, %v1202_v37  ;;  %p10531_p4 = scmp.ne.s32.totalorder %s11733_s26, %s10530_s13 }
  0xd9   : > { %v602_v16 = vand.u32 4294901760, %v601_v43  ;;  %v1216_v23 = vand.u32 4294901760, %v1215_v42  ;;  %v1222_v62 = vsub.f32 %v11016_v48, %v11804_v10  ;;  %8790 = vmatprep.mubr.f32.mxu0 %v11031_v54  ;;  %v609_v30 = vand.u32 4294901760, %v608_v44 }
  0xda   : > { %9640 = vmatprep.subr.bf16.mxu0 %v9639_v50  ;;  %v11805_v20 = vand.u32 4294901760, %v11148_v57  ;;  %v614_v3 = vand.u32 4294901760, %v11153_v11  ;;  %v11165_v28 = vsub.f32 %v10987_v29, %v498_v40  ;;  %9732 = vmatpush3.bf16.msra.mxu1 %v9731_v15  ;;  %v1078_v37 = vsel %vm469_vm1, %v452_v14, 0  ;;  %p10532_p0 = pnand %p10531_p4, %p10834_p5 }
  0xdb   : > { %9642 = vmatpush3.bf16.msra.mxu0 %v9639_v50  ;;  %v1223_v39 = vand.u32 4294901760, %v1222_v62  ;;  %v11806_v34 = vand.u32 4294901760, %v11027_v52  ;;  %v11807_v43 = vand.u32 4294901760, %v11029_v53  ;;  %9733 = vmatprep.subr.bf16.mxu1 %v10617_v0  ;;  %v9643_v42 = vpack.c.bf16 %v609_v30, %v602_v16 }
  0xdc   : > { %v1166_v44 = vsub.f32 %v11148_v57, %v11805_v20  ;;  %v615_v29 = vsub.f32 %v11153_v11, %v614_v3  ;;  %v621_v40 = vand.u32 4294901760, %v11165_v28  ;;  %v11178_v15 = vand.u32 4294901760, %v1078_v37  ;;  %p10533_p8 = pneg %p10532_p0 }
  0xdd   : > { %v9734_v50 = vpack.c.bf16 %v1223_v39, %v1216_v23  ;;  %v1229_v14 = vsub.f32 %v11027_v52, %v11806_v34  ;;  %v1236_v16 = vsub.f32 %v11029_v53, %v11807_v43  ;;  %9644 = vmatprep.subr.bf16.mxu0 %v9643_v42 }
  0xde   : > { %v1167_v62 = vand.u32 4294901760, %v1166_v44  ;;  %v616_v30 = vand.u32 4294901760, %v615_v29  ;;  %v622_v10 = vsub.f32 %v11165_v28, %v621_v40  ;;  %v11190_v23 = vsub.f32 %v1078_v37, %v11178_v15 }
  0xdf   : > { %9735 = vmatpush3.bf16.msra.mxu1 %v9734_v50  ;;  %9646 = vmatpush3.bf16.msra.mxu0 %v9643_v42  ;;  %v1230_v39 = vand.u32 4294901760, %v1229_v14  ;;  %v1237_v20 = vand.u32 4294901760, %v1236_v16  ;;  %v9651_v50 = vpack.c.bf16 %v11037_v56, %v11035_v55  ;;  %v9663_v14 = vpack.c.bf16 %v11165_v28, %v11153_v11 }
  0xe0   : > { %8889 = vmatmul.mubr.f32.gmra.mrb[2].mxu1 %v1167_v62  ;;  %9736 = vmatprep.subr.bf16.mxu1 %v10617_v0  ;;  %v623_v34 = vand.u32 4294901760, %v622_v10  ;;  %v1175_v44 = vand.u32 4294901760, %v11190_v23  ;;  %v9655_v10 = vpack.c.bf16 %v11091_v36, %v11067_v8  ;;  %v9746_v16 = vpack.c.bf16 %v11016_v48, %v11014_v47 }
  0xe1   : > { %8891 = vmatprep.mubr.msk.f32.mxu1 %vm10618_vm0, %v10619_v1  ;;  %v9737_v29 = vpack.c.bf16 %v1237_v20, %v1230_v39  ;;  %v9740_v20 = vpack.c.bf16 %v10976_v25, %v10970_v18  ;;  %v9749_v62 = vpack.c.bf16 %v11029_v53, %v11027_v52  ;;  %v9687_v55 = vpack.c.bf16 %v593_v13, %v586_v22 }
  0xe2   : > { %v9647_v43 = vpack.c.bf16 %v623_v34, %v616_v30  ;;  %v1176_v37 = vsub.f32 %v11190_v23, %v1175_v44  ;;  %v9659_v34 = vpack.c.bf16 %v11123_v9, %v11112_v7  ;;  %v9764_v56 = vpack.c.bf16 %v1193_v61, %v1186_v58 }
  0xe3   : > { %9738 = vmatpush3.bf16.msra.mxu1 %v9737_v29  ;;  %v11835_v18 = vand.u32 4294901760, %v10994_v33  ;;  %v9695_v58 = vpack.c.bf16 %v621_v40, %v614_v3  ;;  %v11836_v61 = vand.u32 4294901760, %v11148_v57 }
  0xe4   : > { %9648 = vmatprep.subr.bf16.mxu0 %v9647_v43  ;;  %9739 = vmatprep.subr.bf16.mxu1 %v10617_v0  ;;  %v1177_v42 = vand.u32 4294901760, %v1176_v37 }
  0xe5   : > { %9650 = vmatpush3.bf16.msra.mxu0 %v9647_v43  ;;  %v9743_v43 = vpack.c.bf16 %v10994_v33, %v10992_v32  ;;  %v9767_v25 = vpack.c.bf16 %v11835_v18, %v1200_v45  ;;  %v11837_v32 = vand.u32 4294901760, %v11014_v47  ;;  %v11838_v33 = vand.u32 4294901760, %v11016_v48 }
  0xe6   : > { %9652 = vmatprep.subr.bf16.mxu0 %v9651_v50  ;;  %8892 = vmatmul.mubr.f32.gmra.mrb[4].mxu1 %v1177_v42 }
  0xe7   : > { %8910 = vmatprep.mubr.msk.f32.mxu1 %vm10618_vm0, %v10619_v1 }
  0xe8   : > { %8791 = vmatmul.mubr.f32.vlgmr.msra.gmra.mrb[0].mxu0 %v11055_v4 }
  0xe9   : > { %9654 = vmatpush3.bf16.msra.mxu0 %v9651_v50  ;;  %8809 = vmatprep.mubr.f32.mxu0 %v11044_v59  ;;  %v9683_v59 = vpack.c.bf16 %v579_v2, %v572_v63  ;;  %v9691_v63 = vpack.c.bf16 %v607_v38, %v600_v27  ;;  %v9770_v2 = vpack.c.bf16 %v11838_v33, %v11837_v32 }
  0xea   : > { %9656 = vmatprep.subr.bf16.mxu0 %v9655_v10  ;;  %8911 = vmatmul.mubr.f32.vlgmr.msra.gmra.mrb[0].mxu1 %v11046_v60 }
  0xeb   : > { %9741 = vmatpush3.bf16.msra.mxu1 %v9740_v20  ;;  %8913 = vmatprep.mubr.msk.f32.mxu1 %vm10618_vm0, %v10619_v1 }
  0xec   : > { %9742 = vmatprep.subr.bf16.mxu1 %v10617_v0 }
  0xed   : > { %9658 = vmatpush3.bf16.msra.mxu0 %v9655_v10 }
  0xee   : > { %9660 = vmatprep.subr.bf16.mxu0 %v9659_v34  ;;  %8914 = vmatmul.mubr.f32.gmra.mrb[2].mxu1 %v11132_v21 }
  0xef   : > { %9744 = vmatpush3.bf16.msra.mxu1 %v9743_v43  ;;  %8916 = vmatprep.mubr.msk.f32.mxu1 %vm10618_vm0, %v10619_v1 }
  0xf0   : > { %9745 = vmatprep.subr.bf16.mxu1 %v10617_v0 }
  0xf1   : > { %9662 = vmatpush3.bf16.msra.mxu0 %v9659_v34 }
  0xf2   : > { %9664 = vmatprep.subr.bf16.mxu0 %v9663_v14  ;;  %8917 = vmatmul.mubr.f32.gmra.mrb[4].mxu1 %v11178_v15 }
  0xf3   : > { %9747 = vmatpush3.bf16.msra.mxu1 %v9746_v16  ;;  %8935 = vmatprep.mubr.msk.f32.mxu1 %vm10618_vm0, %v10619_v1 }
  0xf4   : > { %9748 = vmatprep.subr.bf16.mxu1 %v10617_v0 }
  0xf5   : > { %9666 = vmatpush3.bf16.msra.mxu0 %v9663_v14 }
  0xf6   : > { %9668 = vmatprep.subr.bf16.mxu0 %v10968_v17 }
  0xf7   : > { %9750 = vmatpush3.bf16.msra.mxu1 %v9749_v62 }
  0xf8   : > { %8810 = vmatmul.mubr.f32.vlgmr.msra.gmra.mrb[0].mxu0 %v11078_v19  ;;  %9751 = vmatprep.subr.bf16.mxu1 %v10617_v0 }
  0xf9   : > { %9670 = vmatpush3.bf16.msra.mxu0 %v10968_v17  ;;  %8828 = vmatprep.mubr.f32.mxu0 %v551_v5  ;;  %v11839_v5 = vand.u32 4294901760, %v11027_v52 }
  0xfa   : > { %9672 = vmatprep.subr.bf16.mxu0 %v10982_v26  ;;  %8936 = vmatmul.mubr.f32.vlgmr.msra.gmra.mrb[0].mxu1 %v11059_v6  ;;  %v11840_v6 = vand.u32 4294901760, %v11029_v53 }
  0xfb   : > { %9753 = vmatpush3.bf16.msra.mxu1 %v10974_v24  ;;  %8938 = vmatprep.mubr.msk.f32.mxu1 %vm10618_vm0, %v10619_v1 }
  0xfc   : > { %9754 = vmatprep.subr.bf16.mxu1 %v10617_v0  ;;  %v9773_v8 = vpack.c.bf16 %v11840_v6, %v11839_v5 }
  0xfd   : > { %9674 = vmatpush3.bf16.msra.mxu0 %v10982_v26 }
  0xfe   : > { %9676 = vmatprep.subr.bf16.mxu0 %v11008_v41  ;;  %8939 = vmatmul.mubr.f32.gmra.mrb[2].mxu1 %v11148_v57 }
  0xff   : > { %9756 = vmatpush3.bf16.msra.mxu1 %v10990_v31  ;;  %8941 = vmatprep.mubr.msk.f32.mxu1 %vm10618_vm0, %v10619_v1 }
 0x100   : > { %9757 = vmatprep.subr.bf16.mxu1 %v10617_v0 }
 0x101   : > { %9678 = vmatpush3.bf16.msra.mxu0 %v11008_v41 }
 0x102   : > { %9680 = vmatprep.subr.bf16.mxu0 %v11022_v49  ;;  %8942 = vmatmul.mubr.f32.gmra.mrb[4].mxu1 %v11190_v23 }
 0x103   : > { %9759 = vmatpush3.bf16.msra.mxu1 %v11012_v46  ;;  %8960 = vmatprep.mubr.msk.f32.mxu1 %vm10618_vm0, %v10619_v1 }
 0x104   : > { %9760 = vmatprep.subr.bf16.mxu1 %v10617_v0 }
 0x105   : > { %9682 = vmatpush3.bf16.msra.mxu0 %v11022_v49 }
 0x106   : > { %9684 = vmatprep.subr.bf16.mxu0 %v9683_v59 }
 0x107   : > { %9762 = vmatpush3.bf16.msra.mxu1 %v11025_v51 }
 0x108   : > { %8829 = vmatmul.mubr.f32.vlgmr.msra.gmra.mrb[0].mxu0 %v561_v35  ;;  %9763 = vmatprep.subr.bf16.mxu1 %v10617_v0 }
 0x109   : > { %9686 = vmatpush3.bf16.msra.mxu0 %v9683_v59  ;;  %8847 = vmatprep.mubr.f32.mxu0 %v11031_v54 }
 0x10a   : > { %9688 = vmatprep.subr.bf16.mxu0 %v9687_v55  ;;  %8961 = vmatmul.mubr.f32.vlgmr.msra.gmra.mrb[0].mxu1 %v1155_v12 }
 0x10b   : > { %9765 = vmatpush3.bf16.msra.mxu1 %v9764_v56  ;;  %8963 = vmatprep.mubr.msk.f32.mxu1 %vm10618_vm0, %v10619_v1 }
 0x10c   : > { %9766 = vmatprep.subr.bf16.mxu1 %v10617_v0 }
 0x10d   : > { %9690 = vmatpush3.bf16.msra.mxu0 %v9687_v55 }
 0x10e   : > { %9692 = vmatprep.subr.bf16.mxu0 %v9691_v63  ;;  %8964 = vmatmul.mubr.f32.gmra.mrb[2].mxu1 %v11836_v61 }
 0x10f   : > { %9768 = vmatpush3.bf16.msra.mxu1 %v9767_v25  ;;  %8966 = vmatprep.mubr.msk.f32.mxu1 %vm10618_vm0, %v10619_v1 }
 0x110   : > { %9769 = vmatprep.subr.bf16.mxu1 %v10617_v0 }
 0x111   : > { %9694 = vmatpush3.bf16.msra.mxu0 %v9691_v63 }
 0x112   : > { %9696 = vmatprep.subr.bf16.mxu0 %v9695_v58  ;;  %8967 = vmatmul.mubr.f32.gmra.mrb[4].mxu1 %v1175_v44 }
 0x113   : > { %9771 = vmatpush3.bf16.msra.mxu1 %v9770_v2  ;;  %8985 = vmatprep.mubr.msk.f32.mxu1 %vm10618_vm0, %v10619_v1 }
 0x114   : > { %9772 = vmatprep.subr.bf16.mxu1 %v10617_v0 }
 0x115   : > { %9698 = vmatpush3.bf16.msra.mxu0 %v9695_v58 }
 0x116   : > { %9700 = vmatprep.subr.bf16.mxu0 %v10968_v17 }
 0x117   : > { %9774 = vmatpush3.bf16.msra.mxu1 %v9773_v8 }
 0x118   : > { %8848 = vmatmul.mubr.f32.vlgmr.msra.gmra.mrb[0].mxu0 %v11055_v4  ;;  %9775 = vmatprep.subr.bf16.mxu1 %v10617_v0 }
 0x119   : > { %9702 = vmatpush3.bf16.msra.mxu0 %v10968_v17  ;;  %8866 = vmatprep.mubr.f32.mxu0 %v11031_v54 }
 0x11a   : > { %9704 = vmatprep.subr.bf16.mxu0 %v10982_v26  ;;  %8986 = vmatmul.mubr.f32.vlgmr.msra.gmra.mrb[0].mxu1 %v11046_v60 }
 0x11b   : > { %9777 = vmatpush3.bf16.msra.mxu1 %v10974_v24  ;;  %8988 = vmatprep.mubr.msk.f32.mxu1 %vm10618_vm0, %v10619_v1  ;;  %v8283_v24 = vld [vmem:[%s11790_s6] ss:$0 sm:$0xff] }
 0x11c   : > { %9778 = vmatprep.subr.bf16.mxu1 %v10617_v0 }
 0x11d   : > { %9706 = vmatpush3.bf16.msra.mxu0 %v10982_v26 }
 0x11e   : > { %9708 = vmatprep.subr.bf16.mxu0 %v11008_v41  ;;  %8989 = vmatmul.mubr.f32.gmra.mrb[2].mxu1 %v11132_v21 }
 0x11f   : > { %9780 = vmatpush3.bf16.msra.mxu1 %v10990_v31  ;;  %8991 = vmatprep.mubr.msk.f32.mxu1 %vm10618_vm0, %v10619_v1 }
 0x120   : > { %9781 = vmatprep.subr.bf16.mxu1 %v10617_v0 }
 0x121   : > { %9710 = vmatpush3.bf16.msra.mxu0 %v11008_v41 }
 0x122   : > { %9712 = vmatprep.subr.bf16.mxu0 %v11022_v49  ;;  %8992 = vmatmul.mubr.f32.gmra.mrb[4].mxu1 %v11178_v15 }
 0x123   : > { %9783 = vmatpush3.bf16.msra.mxu1 %v11012_v46  ;;  %9010 = vmatprep.mubr.msk.f32.mxu1 %vm10618_vm0, %v10619_v1 }
 0x124   : > { %9784 = vmatprep.subr.bf16.mxu1 %v10617_v0  ;;  %v8282_v0 = vld [vmem:[%s11788_s4] ss:$0 sm:$0xff] }
 0x125   : > { %9714 = vmatpush3.bf16.msra.mxu0 %v11022_v49 }
 0x127   : > { %9786 = vmatpush3.bf16.msra.mxu1 %v11025_v51 }
 0x128   : > { %8867 = vmatmul.mubr.f32.vlgmr.msra.gmra.mrb[0].mxu0 %v11055_v4 }
 0x12a   : > { %9011 = vmatmul.mubr.f32.vlgmr.msra.gmra.mrb[0].mxu1 %v11046_v60 }
 0x12b   : > { %9013 = vmatprep.mubr.msk.f32.mxu1 %vm10618_vm0, %v10619_v1 }
 0x12e   : > { %9014 = vmatmul.mubr.f32.gmra.mrb[2].mxu1 %v11132_v21 }
 0x12f   : > { %9016 = vmatprep.mubr.msk.f32.mxu1 %vm10618_vm0, %v10619_v1 }
 0x132   : > { %9017 = vmatmul.mubr.f32.gmra.mrb[4].mxu1 %v11178_v15 }
 0x1fb   : > { %v8868_v17 = vpop.f32.mrb[0].mxu0 }
 0x1fc   : > { %v10075_v26 = vadd.f32 %v8868_v17, %v8282_v0  ;;  %v1046_v31 = vpop.f32.mrb[1].mxu0 }
 0x1fd   : > { %v10076_v41 = vadd.f32 %v8282_v0, %v1046_v31  ;;  %v1687_v46 = vpop.f32.mrb[0].mxu1 }
 0x1fe   : > { %v11352_v47 = vmul.f32 0.25, %v10075_v26  ;;  %v11354_v48 = vadd.f32 %v8283_v24, %v1687_v46  ;;  %v9012_v1 = vpop.f32.mrb[1].mxu1 }
 0x1ff   : > { %v11356_v49 = vmul.f32 0.25, %v10076_v41  ;;  %v11415_v41 = vld [vmem:[%s11412_s24] ss:$0 sm:$0xff] }
 0x200   : > { %v1716_v51 = vsel %vm1711_vm2, %v11352_v47, 0  ;;  %2261 = vrot.lane.b32.xlu1 %v11354_v48, %s10620_s22  ;;  %v1719_v53 = vsel %vm1711_vm2, %v11354_v48, 0 }
 0x201   : > { %v1713_v52 = vsel %vm1711_vm2, %v11356_v49, 0  ;;  %v1693_v54 = vpop.f32.mrb[2].mxu1  ;;  %v1728_v4 = vand.u32 4294901760, %v1719_v53  ;;  %v11370_v22 = vand.u32 4294901760, %v1716_v51 }
 0x202   : > { %v11366_v60 = vand.u32 4294901760, %v1713_v52  ;;  %v11368_v19 = vadd.f32 %v8283_v24, %v1693_v54  ;;  %v9015_v12 = vpop.f32.mrb[3].mxu1 }
 0x203   : > { %v1817_v36 = vsub.f32 %v1719_v53, %v1728_v4  ;;  %v1806_v21 = vsub.f32 %v1716_v51, %v11370_v22 }
 0x204   : > { %9034 = vmatprep.mubr.f32.mxu0 %v11366_v60  ;;  %v1796_v35 = vsub.f32 %v1713_v52, %v11366_v60  ;;  %2263 = vrot.lane.b32.xlu1 %v11368_v19, %s10620_s22  ;;  %v1722_v13 = vsel %vm1711_vm2, %v11368_v19, 0 }
 0x205   : > { %v1699_v45 = vpop.f32.mrb[4].mxu1  ;;  %v1731_v3 = vand.u32 4294901760, %v1722_v13  ;;  %v1818_v9 = vand.u32 4294901760, %v1817_v36  ;;  %v1807_v50 = vand.u32 4294901760, %v1806_v21 }
 0x206   : > { %v1797_v7 = vand.u32 4294901760, %v1796_v35  ;;  %v11378_v27 = vadd.f32 %v8283_v24, %v1699_v45  ;;  %v9018_v38 = vpop.f32.mrb[5].mxu1 }
 0x207   : > { %v9787_v57 = vpack.c.bf16 %v1731_v3, %v1728_v4  ;;  %v1824_v28 = vsub.f32 %v1722_v13, %v1731_v3  ;;  %v1819_v23 = vsub.f32 %v1817_v36, %v1818_v9  ;;  %v1808_v43 = vsub.f32 %v1806_v21, %v1807_v50 }
 0x208   : > { %v1798_v11 = vsub.f32 %v1796_v35, %v1797_v7  ;;  %2803 = vrot.lane.b32.xlu1 %v11354_v48, %s10621_s30  ;;  %v1725_v40 = vsel %vm1711_vm2, %v11378_v27, 0 }
 0x209   : > { %9788 = vmatprep.subr.bf16.mxu1 %v9787_v57  ;;  %v1734_v15 = vand.u32 4294901760, %v1725_v40  ;;  %v1825_v39 = vand.u32 4294901760, %v1824_v28  ;;  %v1820_v37 = vand.u32 4294901760, %v1819_v23  ;;  %v1809_v16 = vand.u32 4294901760, %v1808_v43 }
 0x20a   : > { %v1799_v30 = vand.u32 4294901760, %v1798_v11  ;;  %9790 = vmatpush3.bf16.xpose.msra.mxu1 %v9787_v57  ;;  %v9795_v62 = vpack.c.bf16 %v1824_v28, %v1817_v36 }
 0x20b   : > { %9023 = vmatprep.subr.mxu1 %v1734_v15  ;;  %v1826_v44 = vsub.f32 %v1824_v28, %v1825_v39  ;;  %v1831_v29 = vsub.f32 %v1725_v40, %v1734_v15  ;;  %v9803_v59 = vpack.c.bf16 %v1825_v39, %v1818_v9 }
 0x20c   : > { %9025 = vmatprep.mubr.f32.mxu1 %v1799_v30  ;;  %2805 = vrot.lane.b32.xlu1 %v11368_v19, %s10621_s30 }
 0x20d   : > { %v1827_v42 = vand.u32 4294901760, %v1826_v44  ;;  %v1832_v10 = vand.u32 4294901760, %v1831_v29 }
 0x20f   : > { %v9791_v20 = vpack.c.bf16 %v1827_v42, %v1820_v37  ;;  %v1833_v34 = vsub.f32 %v1831_v29, %v1832_v10 }
 0x210   : > { %2799 = vrot.lane.b32.xlu1 %v11356_v49, %s10621_s30 }
 0x211   : > { %9792 = vmatprep.subr.bf16.mxu0 %v9791_v20  ;;  %v1834_v14 = vand.u32 4294901760, %v1833_v34 }
 0x212   : > { %9024 = vmatpush3.xpose.msra.mxu1 %v1734_v15  ;;  %9794 = vmatpush3.bf16.xpose.msra.mxu0 %v9791_v20 }
 0x213   : > { %9032 = vmatprep.subr.mxu0 %v1834_v14 }
 0x214   : > { %2801 = vrot.lane.b32.xlu1 %v11352_v47, %s10621_s30 }
 0x215   : > { %9026 = vmatmul.mubr.f32.vlgmr.msra.gmra.mrb[6].mxu1 %v1809_v16 }
 0x218   : > { %2807 = vrot.lane.b32.xlu1 %v11378_v27, %s10621_s30  ;;  %s11841_s30 = sld [smem:[#allocation23_spill]] }
 0x21a   : > { %9033 = vmatpush3.xpose.msra.mxu0 %v1834_v14 }
 0x21b   : > { %9796 = vmatprep.subr.bf16.mxu0 %v9795_v62 }
 0x21c   : > { %4912 = vrot.lane.b32.xlu1 %v11368_v19, %s10622_s19 }
 0x21d   : > { %9035 = vmatmul.mubr.f32.vlgmr.msra.gmra.mrb[2].mxu0 %v11370_v22 }
 0x21e   : > { %9798 = vmatpush3.bf16.xpose.msra.mxu0 %v9795_v62  ;;  %9043 = vmatprep.mubr.f32.mxu0 %v1796_v35  ;;  %s11738_s3 = scalar_lea.hbm %s11841_s30, %s8292_s29 }
 0x21f   : > { %9041 = vmatprep.subr.mxu0 %v1831_v29 }
 0x220   : > { %4906 = vrot.lane.b32.xlu1 %v11356_v49, %s10622_s19 }
 0x224   : > { %4914 = vrot.lane.b32.xlu1 %v11378_v27, %s10622_s19 }
 0x226   : > { %9042 = vmatpush3.xpose.msra.mxu0 %v1831_v29 }
 0x227   : > { %9800 = vmatprep.subr.bf16.mxu0 %v9787_v57 }
 0x229   : > { %9044 = vmatmul.mubr.f32.vlgmr.msra.gmra.mrb[2].mxu0 %v1806_v21 }
 0x22a   : > { %9802 = vmatpush3.bf16.xpose.msra.mxu0 %v9787_v57  ;;  %9052 = vmatprep.mubr.f32.mxu0 %v1797_v7 }
 0x22b   : > { %9050 = vmatprep.subr.mxu0 %v1734_v15 }
 0x232   : > { %9051 = vmatpush3.xpose.msra.mxu0 %v1734_v15 }
 0x233   : > { %9804 = vmatprep.subr.bf16.mxu0 %v9803_v59 }
 0x235   : > { %9053 = vmatmul.mubr.f32.vlgmr.msra.gmra.mrb[2].mxu0 %v1807_v50 }
 0x236   : > { %9806 = vmatpush3.bf16.xpose.msra.mxu0 %v9803_v59  ;;  %9061 = vmatprep.mubr.f32.mxu0 %v11366_v60 }
 0x237   : > { %9059 = vmatprep.subr.mxu0 %v1832_v10 }
 0x23e   : > { %9060 = vmatpush3.xpose.msra.mxu0 %v1832_v10 }
 0x23f   : > { %9808 = vmatprep.subr.bf16.mxu0 %v9787_v57 }
 0x241   : > { %9062 = vmatmul.mubr.f32.vlgmr.msra.gmra.mrb[2].mxu0 %v11370_v22 }
 0x242   : > { %9810 = vmatpush3.bf16.xpose.msra.mxu0 %v9787_v57  ;;  %9070 = vmatprep.mubr.f32.mxu0 %v11366_v60 }
 0x243   : > { %9068 = vmatprep.subr.mxu0 %v1734_v15 }
 0x24a   : > { %9069 = vmatpush3.xpose.msra.mxu0 %v1734_v15 }
 0x24d   : > { %9071 = vmatmul.mubr.f32.vlgmr.msra.gmra.mrb[2].mxu0 %v11370_v22 }
 0x272   : > { %v2262_v55 = vpop.permute.xlu1 %2261 }
 0x273   : > { %v2277_v56 = vand.u32 4294901760, %v2262_v55 }
 0x275   : > { %v2366_v63 = vsub.f32 %v2262_v55, %v2277_v56 }
 0x276   : > { %v2264_v18 = vpop.permute.xlu1 %2263 }
 0x277   : > { %v2367_v25 = vand.u32 4294901760, %v2366_v63  ;;  %v2280_v58 = vand.u32 4294901760, %v2264_v18 }
 0x279   : > { %v11399_v61 = vpack.c.bf16 %v2280_v58, %v2277_v56  ;;  %v2373_v32 = vsub.f32 %v2264_v18, %v2280_v58  ;;  %v2368_v33 = vsub.f32 %v2366_v63, %v2367_v25 }
 0x27a   : > { %v2804_v34 = vpop.permute.xlu1 %2803 }
 0x27b   : > { %v2374_v2 = vand.u32 4294901760, %v2373_v32  ;;  %9812 = vmatprep.subr.bf16.mxu1 %v11399_v61  ;;  %v11402_v5 = vpack.c.bf16 %v2373_v32, %v2366_v63  ;;  %v2369_v0 = vand.u32 4294901760, %v2368_v33  ;;  %v2813_v63 = vsel %vm1711_vm2, %v2804_v34, 0 }
 0x27c   : > { %9814 = vmatpush3.bf16.msra.mxu1 %v11399_v61  ;;  %v2820_v58 = vand.u32 4294901760, %v2813_v63 }
 0x27d   : > { %v2375_v6 = vsub.f32 %v2373_v32, %v2374_v2  ;;  %v11405_v8 = vpack.c.bf16 %v2374_v2, %v2367_v25 }
 0x27e   : > { %v2806_v43 = vpop.permute.xlu1 %2805 }
 0x27f   : > { %v2376_v17 = vand.u32 4294901760, %v2375_v6  ;;  %v2815_v56 = vsel %vm1711_vm2, %v2806_v43, 0 }
 0x280   : > { %v2823_v18 = vand.u32 4294901760, %v2815_v56 }
 0x281   : > { %v9815_v24 = vpack.c.bf16 %v2376_v17, %v2369_v0  ;;  %v2909_v0 = vsub.f32 %v2813_v63, %v2820_v58 }
 0x282   : > { %v2800_v14 = vpop.permute.xlu1 %2799  ;;  %v2916_v2 = vsub.f32 %v2815_v56, %v2823_v18  ;;  %v11463_v6 = vpack.c.bf16 %v2823_v18, %v2820_v58 }
 0x283   : > { %v2809_v16 = vsel %vm1711_vm2, %v2800_v14, 0 }
 0x284   : > { %v11452_v62 = vand.u32 4294901760, %v2809_v16 }
 0x286   : > { %v2888_v59 = vsub.f32 %v2809_v16, %v11452_v62  ;;  %v2802_v55 = vpop.permute.xlu1 %2801 }
 0x287   : > { %v2811_v33 = vsel %vm1711_vm2, %v2802_v55, 0 }
 0x288   : > { %v2889_v25 = vand.u32 4294901760, %v2888_v59  ;;  %v11466_v17 = vand.u32 4294901760, %v2811_v33 }
 0x28a   : > { %v2808_v32 = vpop.permute.xlu1 %2807 }
 0x2e8   : > { %v9027_v26 = vpop.f32.mrb[6].mxu1 }
 0x2e9   : > { %v1801_v31 = vpop.f32.mrb[7].mxu1  ;;  %v1812_v46 = vadd.f32 %v9027_v26, %v11415_v41 }
 0x2ea   : > { %v1802_v1 = vadd.f32 %v11415_v41, %v1801_v31  ;;  %v2910_v31 = vand.u32 4294901760, %v2909_v0 }
 0x320   : > { %v9072_v51 = vpop.f32.mrb[2].mxu0 }
 0x321   : > { %v10081_v52 = vadd.f32 %v9072_v51, %v1812_v46  ;;  %v2232_v53 = vpop.f32.mrb[3].mxu0  ;;  %v2898_v46 = vsub.f32 %v2811_v33, %v11466_v17 }
 0x322   : > { %v10083_v54 = vadd.f32 %v2232_v53, %v1802_v1 }
 0x323   : > { %v2246_v4 = vsel %vm2242_vm3, %v10081_v52, -inf  ;;  %v2899_v53 = vand.u32 4294901760, %v2898_v46 }
 0x324   : > { %v2243_v60 = vsel %vm2242_vm3, %v10083_v54, -inf }
 0x325   : > { %2244 = vmax.xlane.f32.xlu0 %v2243_v60 }
 0x329   : > { %2247 = vmax.xlane.f32.xlu0 %v2246_v4  ;;  %v2900_v4 = vsub.f32 %v2898_v46, %v2899_v53 }
 0x33f   : > { %2265 = vrot.lane.b32.xlu0 %v11378_v27, %s10620_s22 }
 0x343   : > { %4910 = vrot.lane.b32.xlu0 %v11354_v48, %s10622_s19 }
 0x347   : > { %4908 = vrot.lane.b32.xlu0 %v11352_v47, %s10622_s19  ;;  %s11842_s19 = smov %s11841_s30 }
 0x3b2   : > { %v2245_v12 = vpop.xlane.xlu0 %2244 }
 0x3b3   : > { %v2249_v22 = vsub.f32 %v10083_v54, %v2245_v12 }
 0x3b5   : > { %v2251_v35 = vmul.f32 1.442695, %v2249_v22 }
 0x3b6   : > { %v2248_v36 = vpop.xlane.xlu0 %2247 }
 0x3b7   : > { %10353 = vpow2.f32 %v2251_v35  ;;  %v2250_v13 = vsub.f32 %v10081_v52, %v2248_v36  ;;  %v2911_v52 = vsub.f32 %v2909_v0, %v2910_v31  ;;  %v2901_v36 = vand.u32 4294901760, %v2900_v4 }
 0x3b9   : > { %v2253_v45 = vmul.f32 1.442695, %v2250_v13  ;;  %v2912_v12 = vand.u32 4294901760, %v2911_v52 }
 0x3ba   : > { %v2266_v3 = vpop.permute.xlu0 %2265 }
 0x3bb   : > { %10355 = vpow2.f32 %v2253_v45  ;;  %v11427_v7 = vand.u32 4294901760, %v2266_v3  ;;  %v9843_v45 = vpack.c.bf16 %v2916_v2, %v2909_v0 }
 0x3bd   : > { %9077 = vmatprep.subr.mxu1 %v11427_v7  ;;  %v2380_v11 = vsub.f32 %v2266_v3, %v11427_v7  ;;  %v4913_v3 = vpop.permute.xlu1 %4912 }
 0x3be   : > { %9078 = vmatpush3.msra.mxu1 %v11427_v7 }
 0x3bf   : > { %9816 = vmatprep.subr.bf16.mxu1 %v9815_v24  ;;  %v2381_v44 = vand.u32 4294901760, %v2380_v11 }
 0x3c1   : > { %v11431_v9 = vpop.eup %10353  ;;  %v2382_v42 = vsub.f32 %v2380_v11, %v2381_v44 }
 0x3c2   : > { %v2271_v38 = vsel %vm2242_vm3, %v11431_v9, 0 }
 0x3c3   : > { %v2344_v21 = vand.u32 4294901760, %v2271_v38  ;;  %v2383_v20 = vand.u32 4294901760, %v2382_v42 }
 0x3c5   : > { %v11435_v57 = vpop.eup %10355  ;;  %v2345_v28 = vsub.f32 %v2271_v38, %v2344_v21  ;;  %v4907_v38 = vpop.permute.xlu1 %4906 }
 0x3c6   : > { %v2274_v40 = vsel %vm2242_vm3, %v11435_v57, 0 }
 0x3c7   : > { %v11440_v15 = vand.u32 4294901760, %v2274_v40  ;;  %v2346_v30 = vand.u32 4294901760, %v2345_v28 }
 0x3c9   : > { %v2347_v23 = vsub.f32 %v2345_v28, %v2346_v30  ;;  %v2355_v39 = vsub.f32 %v2274_v40, %v11440_v15 }
 0x3cb   : > { %v2348_v29 = vand.u32 4294901760, %v2347_v23  ;;  %v2356_v50 = vand.u32 4294901760, %v2355_v39 }
 0x3cd   : > { %9079 = vmatprep.mubr.f32.mxu1 %v2348_v29  ;;  %v2357_v37 = vsub.f32 %v2355_v39, %v2356_v50  ;;  %v4915_v29 = vpop.permute.xlu1 %4914 }
 0x3cf   : > { %v2358_v10 = vand.u32 4294901760, %v2357_v37 }
 0x3d1   : > { %9080 = vmatmul.mubr.f32.vlgmr.msra.gmra.mrb[8].mxu1 %v2358_v10  ;;  %v4924_v10 = vsel %vm1711_vm2, %v4915_v29, 0 }
 0x3d2   : > { %9818 = vmatpush3.bf16.msra.mxu1 %v9815_v24  ;;  %9088 = vmatprep.mubr.f32.mxu1 %v2344_v21  ;;  %v2917_v24 = vand.u32 4294901760, %v2916_v2  ;;  %v4933_v14 = vand.u32 4294901760, %v4924_v10 }
 0x3d3   : > { %9086 = vmatprep.subr.mxu1 %v2383_v20 }
 0x3d4   : > { %v2918_v1 = vsub.f32 %v2916_v2, %v2917_v24  ;;  %v5030_v63 = vsub.f32 %v4924_v10, %v4933_v14 }
 0x3d6   : > { %9087 = vmatpush3.msra.mxu1 %v2383_v20  ;;  %v2919_v54 = vand.u32 4294901760, %v2918_v1  ;;  %v5031_v33 = vand.u32 4294901760, %v5030_v63 }
 0x3d7   : > { %9820 = vmatprep.subr.bf16.mxu1 %v11402_v5 }
 0x3d8   : > { %v9839_v22 = vpack.c.bf16 %v2919_v54, %v2912_v12 }
 0x3d9   : > { %9089 = vmatmul.mubr.f32.vlgmr.msra.gmra.mrb[8].mxu1 %v11440_v15 }
 0x3da   : > { %9822 = vmatpush3.bf16.msra.mxu1 %v11402_v5  ;;  %9097 = vmatprep.mubr.f32.mxu1 %v2345_v28  ;;  %v2890_v5 = vsub.f32 %v2888_v59, %v2889_v25 }
 0x3db   : > { %9095 = vmatprep.subr.mxu1 %v2380_v11 }
 0x3dc   : > { %v2891_v26 = vand.u32 4294901760, %v2890_v5 }
 0x3de   : > { %9096 = vmatpush3.msra.mxu1 %v2380_v11  ;;  %v4911_v11 = vpop.permute.xlu0 %4910 }
 0x3df   : > { %9824 = vmatprep.subr.bf16.mxu1 %v11399_v61  ;;  %v4920_v40 = vsel %vm1711_vm2, %v4911_v11, 0 }
 0x3e0   : > { %v4927_v23 = vand.u32 4294901760, %v4920_v40 }
 0x3e1   : > { %9098 = vmatmul.mubr.f32.vlgmr.msra.gmra.mrb[8].mxu1 %v2355_v39 }
 0x3e2   : > { %9826 = vmatpush3.bf16.msra.mxu1 %v11399_v61  ;;  %9106 = vmatprep.mubr.f32.mxu1 %v2346_v30  ;;  %v4909_v39 = vpop.permute.xlu0 %4908  ;;  %v5016_v42 = vsub.f32 %v4920_v40, %v4927_v23 }
 0x3e3   : > { %9104 = vmatprep.subr.mxu1 %v11427_v7  ;;  %v4918_v37 = vsel %vm1711_vm2, %v4909_v39, 0 }
 0x3e4   : > { %v5004_v34 = vand.u32 4294901760, %v4918_v37 }
 0x3e6   : > { %9105 = vmatpush3.msra.mxu1 %v11427_v7 }
 0x3e7   : > { %9828 = vmatprep.subr.bf16.mxu1 %v11405_v8 }
 0x3e9   : > { %9107 = vmatmul.mubr.f32.vlgmr.msra.gmra.mrb[8].mxu1 %v2356_v50 }
 0x3ea   : > { %9830 = vmatpush3.bf16.msra.mxu1 %v11405_v8  ;;  %9115 = vmatprep.mubr.f32.mxu1 %v2344_v21  ;;  %v2817_v8 = vsel %vm1711_vm2, %v2808_v32, 0 }
 0x3eb   : > { %9113 = vmatprep.subr.mxu1 %v2381_v44 }
 0x3ee   : > { %9114 = vmatpush3.msra.mxu1 %v2381_v44 }
 0x3ef   : > { %9832 = vmatprep.subr.bf16.mxu1 %v11399_v61 }
 0x3f1   : > { %9116 = vmatmul.mubr.f32.vlgmr.msra.gmra.mrb[8].mxu1 %v11440_v15 }
 0x3f2   : > { %9834 = vmatpush3.bf16.msra.mxu1 %v11399_v61  ;;  %9124 = vmatprep.mubr.f32.mxu1 %v2344_v21  ;;  %v11470_v61 = vand.u32 4294901760, %v2817_v8  ;;  %v4916_v21 = vsel %vm1711_vm2, %v4907_v38, 0 }
 0x3f3   : > { %9122 = vmatprep.subr.mxu1 %v11427_v7  ;;  %v11486_v28 = vand.u32 4294901760, %v4916_v21 }
 0x3f4   : > { %v2923_v51 = vsub.f32 %v2817_v8, %v11470_v61  ;;  %v5032_v8 = vsub.f32 %v5030_v63, %v5031_v33 }
 0x3f5   : > { %v4995_v30 = vsub.f32 %v4916_v21, %v11486_v28 }
 0x3f6   : > { %9123 = vmatpush3.msra.mxu1 %v11427_v7  ;;  %v2924_v60 = vand.u32 4294901760, %v2923_v51  ;;  %v9851_v7 = vpack.c.bf16 %v2917_v24, %v2910_v31  ;;  %v5033_v24 = vand.u32 4294901760, %v5032_v8 }
 0x3f7   : > { %9836 = vmatprep.subr.bf16.mxu1 %v11463_v6  ;;  %v4996_v50 = vand.u32 4294901760, %v4995_v30 }
 0x3f8   : > { %v2925_v35 = vsub.f32 %v2923_v51, %v2924_v60 }
 0x3f9   : > { %9125 = vmatmul.mubr.f32.vlgmr.msra.gmra.mrb[8].mxu1 %v11440_v15  ;;  %v4922_v15 = vsel %vm1711_vm2, %v4913_v3, 0  ;;  %v4997_v43 = vsub.f32 %v4995_v30, %v4996_v50 }
 0x3fa   : > { %9133 = vmatprep.mubr.f32.mxu1 %v2891_v26  ;;  %v2926_v13 = vand.u32 4294901760, %v2925_v35  ;;  %v4930_v44 = vand.u32 4294901760, %v4922_v15 }
 0x3fb   : > { %v4998_v56 = vand.u32 4294901760, %v4997_v43 }
 0x3fc   : > { %v5023_v20 = vsub.f32 %v4922_v15, %v4930_v44  ;;  %v9931_v16 = vpack.c.bf16 %v4930_v44, %v4927_v23 }
 0x3fd   : > { %9838 = vmatpush3.bf16.xpose.msra.mxu1 %v11463_v6 }
 0x3fe   : > { %9131 = vmatprep.subr.mxu1 %v11470_v61  ;;  %v5024_v55 = vand.u32 4294901760, %v5023_v20 }
 0x405   : > { %9132 = vmatpush3.xpose.msra.mxu1 %v11470_v61 }
 0x406   : > { %9840 = vmatprep.subr.bf16.mxu1 %v9839_v22 }
 0x408   : > { %9134 = vmatmul.mubr.f32.vlgmr.msra.gmra.mrb[10].mxu1 %v2901_v36 }
 0x409   : > { %9842 = vmatpush3.bf16.xpose.msra.mxu1 %v9839_v22  ;;  %9142 = vmatprep.mubr.f32.mxu1 %v11452_v62 }
 0x40a   : > { %9140 = vmatprep.subr.mxu1 %v2926_v13 }
 0x411   : > { %9141 = vmatpush3.xpose.msra.mxu1 %v2926_v13 }
 0x412   : > { %9844 = vmatprep.subr.bf16.mxu1 %v9843_v45 }
 0x414   : > { %9143 = vmatmul.mubr.f32.vlgmr.msra.gmra.mrb[10].mxu1 %v11466_v17 }
 0x415   : > { %9846 = vmatpush3.bf16.xpose.msra.mxu1 %v9843_v45  ;;  %9151 = vmatprep.mubr.f32.mxu1 %v2888_v59  ;;  %v5017_v59 = vand.u32 4294901760, %v5016_v42 }
 0x416   : > { %9149 = vmatprep.subr.mxu1 %v2923_v51 }
 0x417   : > { %v5018_v18 = vsub.f32 %v5016_v42, %v5017_v59 }
 0x419   : > { %v5019_v32 = vand.u32 4294901760, %v5018_v18 }
 0x41d   : > { %9150 = vmatpush3.xpose.msra.mxu1 %v2923_v51 }
 0x41e   : > { %9848 = vmatprep.subr.bf16.mxu1 %v11463_v6 }
 0x420   : > { %9152 = vmatmul.mubr.f32.vlgmr.msra.gmra.mrb[10].mxu1 %v2898_v46 }
 0x421   : > { %9850 = vmatpush3.bf16.xpose.msra.mxu1 %v11463_v6  ;;  %9160 = vmatprep.mubr.f32.mxu1 %v2889_v25  ;;  %v5025_v25 = vsub.f32 %v5023_v20, %v5024_v55 }
 0x422   : > { %9158 = vmatprep.subr.mxu1 %v11470_v61 }
 0x423   : > { %v5026_v5 = vand.u32 4294901760, %v5025_v25  ;;  %v2258_v25 = vsel %vm2242_vm3, %v11435_v57, 0.0 }
 0x429   : > { %9159 = vmatpush3.xpose.msra.mxu1 %v11470_v61 }
 0x42a   : > { %9852 = vmatprep.subr.bf16.mxu1 %v9851_v7 }
 0x42c   : > { %9161 = vmatmul.mubr.f32.vlgmr.msra.gmra.mrb[10].mxu1 %v2899_v53 }
 0x42d   : > { %9854 = vmatpush3.bf16.xpose.msra.mxu1 %v9851_v7  ;;  %9169 = vmatprep.mubr.f32.mxu1 %v11452_v62 }
 0x42e   : > { %9167 = vmatprep.subr.mxu1 %v2924_v60 }
 0x435   : > { %9168 = vmatpush3.xpose.msra.mxu1 %v2924_v60 }
 0x436   : > { %9856 = vmatprep.subr.bf16.mxu1 %v11463_v6 }
 0x438   : > { %9170 = vmatmul.mubr.f32.vlgmr.msra.gmra.mrb[10].mxu1 %v11466_v17 }
 0x439   : > { %9858 = vmatpush3.bf16.xpose.msra.mxu1 %v11463_v6  ;;  %9178 = vmatprep.mubr.f32.mxu1 %v11452_v62  ;;  %v5005_v62 = vsub.f32 %v4918_v37, %v5004_v34  ;;  %v9935_v6 = vpack.c.bf16 %v5026_v5, %v5019_v32 }
 0x43a   : > { %9176 = vmatprep.subr.mxu1 %v11470_v61 }
 0x43b   : > { %v5006_v58 = vand.u32 4294901760, %v5005_v62 }
 0x43d   : > { %v5007_v2 = vsub.f32 %v5005_v62, %v5006_v58 }
 0x43f   : > { %v5008_v0 = vand.u32 4294901760, %v5007_v2 }
 0x441   : > { %9177 = vmatpush3.xpose.msra.mxu1 %v11470_v61  ;;  %v9947_v61 = vpack.c.bf16 %v5024_v55, %v5017_v59 }
 0x442   : > { %9932 = vmatprep.subr.bf16.mxu1 %v9931_v16 }
 0x444   : > { %9179 = vmatmul.mubr.f32.vlgmr.msra.gmra.mrb[10].mxu1 %v11466_v17  ;;  %v9939_v17 = vpack.c.bf16 %v5023_v20, %v5016_v42 }
 0x445   : > { %9934 = vmatpush3.bf16.xpose.msra.mxu1 %v9931_v16  ;;  %9325 = vmatprep.mubr.f32.mxu1 %v4998_v56 }
 0x446   : > { %9323 = vmatprep.subr.mxu1 %v4933_v14 }
 0x44d   : > { %9324 = vmatpush3.xpose.msra.mxu1 %v4933_v14 }
 0x44e   : > { %9936 = vmatprep.subr.bf16.mxu1 %v9935_v6 }
 0x450   : > { %9326 = vmatmul.mubr.f32.vlgmr.msra.gmra.mrb[12].mxu1 %v5008_v0 }
 0x451   : > { %9938 = vmatpush3.bf16.xpose.msra.mxu1 %v9935_v6  ;;  %9334 = vmatprep.mubr.f32.mxu1 %v11486_v28 }
 0x452   : > { %9332 = vmatprep.subr.mxu1 %v5033_v24 }
 0x459   : > { %9333 = vmatpush3.xpose.msra.mxu1 %v5033_v24 }
 0x45a   : > { %9940 = vmatprep.subr.bf16.mxu1 %v9939_v17 }
 0x45c   : > { %9335 = vmatmul.mubr.f32.vlgmr.msra.gmra.mrb[12].mxu1 %v5004_v34 }
 0x45d   : > { %9942 = vmatpush3.bf16.xpose.msra.mxu1 %v9939_v17  ;;  %9343 = vmatprep.mubr.f32.mxu1 %v4995_v30 }
 0x45e   : > { %9341 = vmatprep.subr.mxu1 %v5030_v63 }
 0x465   : > { %9342 = vmatpush3.xpose.msra.mxu1 %v5030_v63  ;;  %v2255_v63 = vsel %vm2242_vm3, %v11431_v9, 0.0 }
 0x466   : > { %9944 = vmatprep.subr.bf16.mxu1 %v9931_v16 }
 0x468   : > { %9344 = vmatmul.mubr.f32.vlgmr.msra.gmra.mrb[12].mxu1 %v5005_v62 }
 0x469   : > { %9946 = vmatpush3.bf16.xpose.msra.mxu1 %v9931_v16  ;;  %9352 = vmatprep.mubr.f32.mxu1 %v4996_v50 }
 0x46a   : > { %9350 = vmatprep.subr.mxu1 %v4933_v14 }
 0x471   : > { %9351 = vmatpush3.xpose.msra.mxu1 %v4933_v14 }
 0x472   : > { %9948 = vmatprep.subr.bf16.mxu1 %v9947_v61 }
 0x474   : > { %9353 = vmatmul.mubr.f32.vlgmr.msra.gmra.mrb[12].mxu1 %v5006_v58 }
 0x475   : > { %9950 = vmatpush3.bf16.xpose.msra.mxu1 %v9947_v61  ;;  %9361 = vmatprep.mubr.f32.mxu1 %v11486_v28 }
 0x476   : > { %9359 = vmatprep.subr.mxu1 %v5031_v33 }
 0x47d   : > { %9360 = vmatpush3.xpose.msra.mxu1 %v5031_v33 }
 0x47e   : > { %9952 = vmatprep.subr.bf16.mxu1 %v9931_v16 }
 0x480   : > { %9362 = vmatmul.mubr.f32.vlgmr.msra.gmra.mrb[12].mxu1 %v5004_v34 }
 0x481   : > { %9954 = vmatpush3.bf16.xpose.msra.mxu1 %v9931_v16  ;;  %9370 = vmatprep.mubr.f32.mxu1 %v11486_v28 }
 0x482   : > { %9368 = vmatprep.subr.mxu1 %v4933_v14 }
 0x489   : > { %9369 = vmatpush3.xpose.msra.mxu1 %v4933_v14 }
 0x48c   : > { %9371 = vmatmul.mubr.f32.vlgmr.msra.gmra.mrb[12].mxu1 %v5004_v34 }
 0x4cc   : > { %v11503_v26 = vpop.f32.mrb[8].mxu1 }
 0x4cd   : > { %v11505_v31 = vpop.f32.mrb[9].mxu1 }
 0x517   : > { %v9180_v46 = vpop.f32.mrb[10].mxu1 }
 0x518   : > { %v10084_v1 = vadd.f32 %v9180_v46, %v11415_v41  ;;  %v3324_v51 = vpop.f32.mrb[11].mxu1 }
 0x519   : > { %v10085_v52 = vadd.f32 %v11415_v41, %v3324_v51  ;;  %v3889_v51 = vld [vmem:[#allocation10 + $0x18] sm:$0xff] }
 0x51a   : > { %v3337_v53 = vsel %vm2242_vm3, %v10084_v1, -inf }
 0x51b   : > { %3338 = vmax.xlane.f32.xlu0 %v3337_v53  ;;  %v3334_v54 = vsel %vm2242_vm3, %v10085_v52, -inf  ;;  %v3900_v53 = vand.u32 4294901760, %v3889_v51 }
 0x51c   : > { %3335 = vmax.xlane.f32.xlu1 %v3334_v54 }
 0x52d   : > { %3354 = vrot.lane.b32.xlu1 %v11368_v19, %s10623_s28 }
 0x531   : > { %3352 = vrot.lane.b32.xlu0 %v11354_v48, %s10623_s28 }
 0x535   : > { %3356 = vrot.lane.b32.xlu0 %v11378_v27, %s10623_s28 }
 0x55f   : > { %v11514_v60 = vpop.f32.mrb[12].mxu1 }
 0x560   : > { %v11516_v4 = vpop.f32.mrb[13].mxu1 }
 0x5a8   : > { %v3339_v12 = vpop.xlane.xlu0 %3338 }
 0x5a9   : > { %v3341_v22 = vsub.f32 %v10084_v1, %v3339_v12  ;;  %v3336_v35 = vpop.xlane.xlu1 %3335 }
 0x5aa   : > { %v3340_v36 = vsub.f32 %v10085_v52, %v3336_v35 }
 0x5ab   : > { %v3344_v13 = vmul.f32 1.442695, %v3341_v22  ;;  %v11585_v22 = vsub.f32 %v3889_v51, %v3900_v53 }
 0x5ac   : > { %v3342_v45 = vmul.f32 1.442695, %v3340_v36  ;;  %v3353_v3 = vpop.permute.xlu0 %3352 }
 0x5ad   : > { %10357 = vpow2.f32 %v3344_v13  ;;  %v3368_v7 = vand.u32 4294901760, %v3353_v3  ;;  %v3355_v38 = vpop.permute.xlu1 %3354  ;;  %v3993_v36 = vand.u32 4294901760, %v11585_v22 }
 0x5ae   : > { %10359 = vpow2.f32 %v3342_v45  ;;  %v3371_v21 = vand.u32 4294901760, %v3355_v38 }
 0x5af   : > { %v11518_v11 = vsub.f32 %v3353_v3, %v3368_v7 }
 0x5b0   : > { %v11520_v28 = vpack.c.bf16 %v3371_v21, %v3368_v7  ;;  %v11522_v40 = vsub.f32 %v3355_v38, %v3371_v21  ;;  %v3357_v15 = vpop.permute.xlu0 %3356  ;;  %v3994_v38 = vsub.f32 %v11585_v22, %v3993_v36 }
 0x5b1   : > { %v3458_v30 = vand.u32 4294901760, %v11518_v11  ;;  %v11525_v23 = vand.u32 4294901760, %v3357_v15 }
 0x5b2   : > { %v3465_v39 = vand.u32 4294901760, %v11522_v40  ;;  %9860 = vmatprep.subr.bf16.mxu0 %v11520_v28  ;;  %v9867_v9 = vpack.c.bf16 %v11522_v40, %v11518_v11 }
 0x5b3   : > { %v3459_v44 = vsub.f32 %v11518_v11, %v3458_v30  ;;  %9862 = vmatpush3.bf16.msra.mxu0 %v11520_v28  ;;  %v3471_v16 = vsub.f32 %v3357_v15, %v11525_v23  ;;  %v3995_v15 = vand.u32 4294901760, %v3994_v38 }
 0x5b4   : > { %v3466_v29 = vsub.f32 %v11522_v40, %v3465_v39  ;;  %9185 = vmatprep.subr.mxu0 %v11525_v23  ;;  %v9875_v57 = vpack.c.bf16 %v3465_v39, %v3458_v30 }
 0x5b5   : > { %v3460_v50 = vand.u32 4294901760, %v3459_v44  ;;  %v3472_v32 = vand.u32 4294901760, %v3471_v16 }
 0x5b6   : > { %v3467_v37 = vand.u32 4294901760, %v3466_v29 }
 0x5b7   : > { %v10358_v42 = vpop.eup %10357  ;;  %9186 = vmatpush3.msra.mxu0 %v11525_v23  ;;  %v3473_v6 = vsub.f32 %v3471_v16, %v3472_v32 }
 0x5b8   : > { %v10360_v10 = vpop.eup %10359  ;;  %v3365_v20 = vsel %vm2242_vm3, %v10358_v42, 0  ;;  %v3349_v34 = vsel %vm2242_vm3, %v10358_v42, 0.0  ;;  %v9863_v43 = vpack.c.bf16 %v3467_v37, %v3460_v50 }
 0x5b9   : > { %v3445_v14 = vand.u32 4294901760, %v3365_v20  ;;  %3350 = vadd.xlane.f32.xlu0 %v3349_v34  ;;  %v3346_v59 = vsel %vm2242_vm3, %v10360_v10, 0.0  ;;  %v3362_v55 = vsel %vm2242_vm3, %v10360_v10, 0  ;;  %v3474_v24 = vand.u32 4294901760, %v3473_v6 }
 0x5ba   : > { %3347 = vadd.xlane.f32.xlu1 %v3346_v59  ;;  %9864 = vmatprep.subr.bf16.mxu0 %v9863_v43  ;;  %v3435_v62 = vand.u32 4294901760, %v3362_v55 }
 0x5bb   : > { %v3446_v56 = vsub.f32 %v3365_v20, %v3445_v14 }
 0x5bc   : > { %v3436_v18 = vsub.f32 %v3362_v55, %v3435_v62 }
 0x5bd   : > { %2256 = vadd.xlane.f32.xlu0 %v2255_v63  ;;  %v3447_v58 = vand.u32 4294901760, %v3446_v56 }
 0x5be   : > { %2259 = vadd.xlane.f32.xlu1 %v2258_v25  ;;  %v3437_v33 = vand.u32 4294901760, %v3436_v18 }
 0x5bf   : > { %v3448_v2 = vsub.f32 %v3446_v56, %v3447_v58 }
 0x5c0   : > { %v3438_v5 = vsub.f32 %v3436_v18, %v3437_v33 }
 0x5c1   : > { %v3449_v0 = vand.u32 4294901760, %v3448_v2 }
 0x5c2   : > { %v3439_v8 = vand.u32 4294901760, %v3438_v5 }
 0x5c4   : > { %9187 = vmatprep.mubr.f32.mxu0 %v3439_v8 }
 0x5c5   : > { %9188 = vmatmul.mubr.f32.vlgmr.msra.gmra.mrb[4].mxu0 %v3449_v0 }
 0x5c6   : > { %9866 = vmatpush3.bf16.msra.mxu0 %v9863_v43  ;;  %9196 = vmatprep.mubr.f32.mxu0 %v3435_v62 }
 0x5c7   : > { %9194 = vmatprep.subr.mxu0 %v3474_v24 }
 0x5ca   : > { %9195 = vmatpush3.msra.mxu0 %v3474_v24 }
 0x5cb   : > { %9868 = vmatprep.subr.bf16.mxu0 %v9867_v9 }
 0x5cd   : > { %9197 = vmatmul.mubr.f32.vlgmr.msra.gmra.mrb[4].mxu0 %v3445_v14 }
 0x5ce   : > { %9870 = vmatpush3.bf16.msra.mxu0 %v9867_v9  ;;  %9205 = vmatprep.mubr.f32.mxu0 %v3436_v18 }
 0x5cf   : > { %9203 = vmatprep.subr.mxu0 %v3471_v16  ;;  %6513 = vrot.lane.b32.xlu1 %v11368_v19, %s10624_s9 }
 0x5d2   : > { %9204 = vmatpush3.msra.mxu0 %v3471_v16 }
 0x5d3   : > { %9872 = vmatprep.subr.bf16.mxu0 %v11520_v28  ;;  %6507 = vrot.lane.b32.xlu1 %v11356_v49, %s10624_s9  ;;  %v11568_v49 = vadd.f32 %v11514_v60, %v11415_v41 }
 0x5d4   : > { %6511 = vrot.lane.b32.xlu0 %v11354_v48, %s10624_s9 }
 0x5d5   : > { %9206 = vmatmul.mubr.f32.vlgmr.msra.gmra.mrb[4].mxu0 %v3446_v56  ;;  %v5444_v61 = vsel %vm2242_vm3, %v11568_v49, -inf }
 0x5d6   : > { %9874 = vmatpush3.bf16.msra.mxu0 %v11520_v28  ;;  %9214 = vmatprep.mubr.f32.mxu0 %v3437_v33 }
 0x5d7   : > { %9212 = vmatprep.subr.mxu0 %v11525_v23  ;;  %6515 = vrot.lane.b32.xlu1 %v11378_v27, %s10624_s9 }
 0x5d8   : > { %6509 = vrot.lane.b32.xlu0 %v11352_v47, %s10624_s9  ;;  %v11564_v47 = vadd.f32 %v11415_v41, %v11516_v4  ;;  %v3888_v41 = vld [vmem:[#allocation10 + $0x10] sm:$0xff] }
 0x5d9   : > { %v3897_v52 = vand.u32 4294901760, %v3888_v41 }
 0x5da   : > { %9213 = vmatpush3.msra.mxu0 %v11525_v23  ;;  %v5441_v17 = vsel %vm2242_vm3, %v11564_v47, -inf }
 0x5db   : > { %9876 = vmatprep.subr.bf16.mxu0 %v9875_v57  ;;  %v11581_v4 = vpack.c.bf16 %v3900_v53, %v3897_v52  ;;  %v11583_v12 = vsub.f32 %v3888_v41, %v3897_v52 }
 0x5dd   : > { %9215 = vmatmul.mubr.f32.vlgmr.msra.gmra.mrb[4].mxu0 %v3447_v58  ;;  %v3986_v35 = vand.u32 4294901760, %v11583_v12 }
 0x5de   : > { %9878 = vmatpush3.bf16.msra.mxu0 %v9875_v57  ;;  %9223 = vmatprep.mubr.f32.mxu0 %v3435_v62 }
 0x5df   : > { %9221 = vmatprep.subr.mxu0 %v3472_v32  ;;  %v3987_v7 = vsub.f32 %v11583_v12, %v3986_v35  ;;  %v11626_v51 = vpack.c.bf16 %v3993_v36, %v3986_v35 }
 0x5e1   : > { %v3988_v40 = vand.u32 4294901760, %v3987_v7 }
 0x5e2   : > { %9222 = vmatpush3.msra.mxu0 %v3472_v32 }
 0x5e3   : > { %9880 = vmatprep.subr.bf16.mxu0 %v11520_v28  ;;  %v11600_v37 = vpack.c.bf16 %v3995_v15, %v3988_v40 }
 0x5e5   : > { %9224 = vmatmul.mubr.f32.vlgmr.msra.gmra.mrb[4].mxu0 %v3445_v14 }
 0x5e6   : > { %9882 = vmatpush3.bf16.msra.mxu0 %v11520_v28  ;;  %9232 = vmatprep.mubr.f32.mxu0 %v3435_v62 }
 0x5e7   : > { %9230 = vmatprep.subr.mxu0 %v11525_v23 }
 0x5ea   : > { %9231 = vmatpush3.msra.mxu0 %v11525_v23 }
 0x5eb   : > { %9884 = vmatprep.subr.bf16.mxu0 %v11581_v4 }
 0x5ed   : > { %9233 = vmatmul.mubr.f32.vlgmr.msra.gmra.mrb[4].mxu0 %v3445_v14 }
 0x5ee   : > { %9886 = vmatpush3.bf16.msra.mxu0 %v11581_v4 }
 0x5ef   : > { %9888 = vmatprep.subr.bf16.mxu0 %v11600_v37 }
 0x5f7   : > { %5442 = vmax.xlane.f32.xlu0 %v5441_v17 }
 0x5fb   : > { %5445 = vmax.xlane.f32.xlu1 %v5444_v61 }
 0x60c   : > { %5461 = vrot.lane.b32.xlu1 %v11368_v19, %s10625_s0 }
 0x60d   : > { %5459 = vrot.lane.b32.xlu0 %v11354_v48, %s10625_s0 }
 0x611   : > { %5463 = vrot.lane.b32.xlu0 %v11378_v27, %s10625_s0 }
 0x646   : > { %v11577_v46 = vpop.xlane.xlu0 %3350 }
 0x647   : > { %v11579_v1 = vpop.xlane.xlu1 %3347 }
 0x64a   : > { %v2257_v54 = vpop.xlane.xlu0 %2256 }
 0x64b   : > { %10361 = vrcp.f32 %v2257_v54  ;;  %v2260_v60 = vpop.xlane.xlu1 %2259 }
 0x64c   : > { %10363 = vrcp.f32 %v2260_v60 }
 0x64e   : > { %v6512_v13 = vpop.permute.xlu0 %6511 }
 0x64f   : > { %v6521_v45 = vsel %vm1711_vm2, %v6512_v13, 0  ;;  %v6514_v3 = vpop.permute.xlu1 %6513 }
 0x650   : > { %v6528_v21 = vand.u32 4294901760, %v6521_v45  ;;  %v6523_v11 = vsel %vm1711_vm2, %v6514_v3, 0 }
 0x651   : > { %v6531_v28 = vand.u32 4294901760, %v6523_v11 }
 0x652   : > { %v11595_v30 = vsub.f32 %v6521_v45, %v6528_v21  ;;  %v6510_v23 = vpop.permute.xlu0 %6509 }
 0x653   : > { %v11597_v39 = vpack.c.bf16 %v6531_v28, %v6528_v21  ;;  %v6624_v44 = vsub.f32 %v6523_v11, %v6531_v28  ;;  %v6519_v29 = vsel %vm1711_vm2, %v6510_v23, 0  ;;  %v6508_v50 = vpop.permute.xlu1 %6507 }
 0x654   : > { %v6618_v42 = vand.u32 4294901760, %v11595_v30  ;;  %v11603_v10 = vand.u32 4294901760, %v6519_v29  ;;  %v6517_v20 = vsel %vm1711_vm2, %v6508_v50, 0 }
 0x655   : > { %v10362_v34 = vpop.eup %10361  ;;  %v6625_v43 = vand.u32 4294901760, %v6624_v44  ;;  %v11606_v14 = vand.u32 4294901760, %v6517_v20  ;;  %10004 = vmatprep.subr.bf16.mxu1 %v11597_v39  ;;  %v10011_v52 = vpack.c.bf16 %v6624_v44, %v11595_v30 }
 0x656   : > { %v10364_v16 = vpop.eup %10363  ;;  %v11611_v59 = vmul.f32 %v10362_v34, %v11505_v31  ;;  %v6619_v55 = vsub.f32 %v11595_v30, %v6618_v42  ;;  %v6606_v62 = vsub.f32 %v6519_v29, %v11603_v10  ;;  %10006 = vmatpush3.bf16.xpose.msra.mxu1 %v11597_v39  ;;  %v11623_v31 = vpack.c.bf16 %v11585_v22, %v11583_v12  ;;  %v2798_v34 = vld [vmem:[#allocation10 + $0x8] sm:$0xff] }
 0x657   : > { %v11617_v56 = vmul.f32 %v10364_v16, %v11503_v26  ;;  %v6626_v63 = vsub.f32 %v6624_v44, %v6625_v43  ;;  %v6596_v18 = vsub.f32 %v6517_v20, %v11606_v14  ;;  %v6516_v25 = vpop.permute.xlu1 %6515  ;;  %v10019_v53 = vpack.c.bf16 %v6625_v43, %v6618_v42  ;;  %v2797_v20 = vld [vmem:[#allocation10] sm:$0xff] }
 0x658   : > { %v6607_v58 = vand.u32 4294901760, %v6606_v62  ;;  %v6525_v32 = vsel %vm1711_vm2, %v6516_v25, 0  ;;  %v6620_v5 = vand.u32 4294901760, %v6619_v55  ;;  %v4405_v43 = vand.u32 4294901760, %v2797_v20 }
 0x659   : > { %v6597_v33 = vand.u32 4294901760, %v6596_v18  ;;  %v6534_v2 = vand.u32 4294901760, %v6525_v32  ;;  %v6627_v6 = vand.u32 4294901760, %v6626_v63 }
 0x65a   : > { %v6608_v8 = vsub.f32 %v6606_v62, %v6607_v58  ;;  %v4493_v16 = vsub.f32 %v2797_v20, %v4405_v43 }
 0x65b   : > { %v6631_v0 = vsub.f32 %v6525_v32, %v6534_v2  ;;  %9473 = vmatprep.subr.mxu1 %v6534_v2  ;;  %v6598_v26 = vsub.f32 %v6596_v18, %v6597_v33  ;;  %v10007_v9 = vpack.c.bf16 %v6627_v6, %v6620_v5 }
 0x65c   : > { %v6609_v17 = vand.u32 4294901760, %v6608_v8  ;;  %v4494_v63 = vand.u32 4294901760, %v4493_v16 }
 0x65d   : > { %v6599_v24 = vand.u32 4294901760, %v6598_v26  ;;  %v6632_v57 = vand.u32 4294901760, %v6631_v0 }
 0x65e   : > { %9474 = vmatpush3.xpose.msra.mxu1 %v6534_v2 }
 0x65f   : > { %9475 = vmatprep.mubr.f32.mxu1 %v6599_v24  ;;  %10008 = vmatprep.subr.bf16.mxu1 %v10007_v9  ;;  %v6633_v61 = vsub.f32 %v6631_v0, %v6632_v57 }
 0x661   : > { %9476 = vmatmul.mubr.f32.vlgmr.msra.gmra.mrb[14].mxu1 %v6609_v17  ;;  %v6634_v41 = vand.u32 4294901760, %v6633_v61 }
 0x662   : > { %10010 = vmatpush3.bf16.xpose.msra.mxu1 %v10007_v9  ;;  %9484 = vmatprep.mubr.f32.mxu1 %v11606_v14 }
 0x663   : > { %9482 = vmatprep.subr.mxu1 %v6634_v41 }
 0x66a   : > { %9483 = vmatpush3.xpose.msra.mxu1 %v6634_v41 }
 0x66b   : > { %10012 = vmatprep.subr.bf16.mxu1 %v10011_v52 }
 0x66d   : > { %9485 = vmatmul.mubr.f32.vlgmr.msra.gmra.mrb[14].mxu1 %v11603_v10 }
 0x66e   : > { %10014 = vmatpush3.bf16.xpose.msra.mxu1 %v10011_v52  ;;  %9493 = vmatprep.mubr.f32.mxu1 %v6596_v18 }
 0x66f   : > { %9491 = vmatprep.subr.mxu1 %v6631_v0 }
 0x676   : > { %9492 = vmatpush3.xpose.msra.mxu1 %v6631_v0 }
 0x677   : > { %10016 = vmatprep.subr.bf16.mxu1 %v11597_v39 }
 0x679   : > { %9494 = vmatmul.mubr.f32.vlgmr.msra.gmra.mrb[14].mxu1 %v6606_v62 }
 0x67a   : > { %10018 = vmatpush3.bf16.xpose.msra.mxu1 %v11597_v39  ;;  %9502 = vmatprep.mubr.f32.mxu1 %v6597_v33 }
 0x67b   : > { %9500 = vmatprep.subr.mxu1 %v6534_v2 }
 0x682   : > { %9501 = vmatpush3.xpose.msra.mxu1 %v6534_v2 }
 0x683   : > { %10020 = vmatprep.subr.bf16.mxu1 %v10019_v53 }
 0x684   : > { %v5443_v54 = vpop.xlane.xlu0 %5442 }
 0x685   : > { %v5447_v60 = vsub.f32 %v11564_v47, %v5443_v54  ;;  %9503 = vmatmul.mubr.f32.vlgmr.msra.gmra.mrb[14].mxu1 %v6607_v58  ;;  %v4402_v58 = vsel %vm1711_vm2, %v11617_v56, 0 }
 0x686   : > { %10022 = vmatpush3.bf16.xpose.msra.mxu1 %v10019_v53  ;;  %9511 = vmatprep.mubr.f32.mxu1 %v11606_v14 }
 0x687   : > { %v5449_v12 = vmul.f32 1.442695, %v5447_v60  ;;  %9509 = vmatprep.subr.mxu1 %v6632_v57 }
 0x688   : > { %v5446_v22 = vpop.xlane.xlu1 %5445  ;;  %v5460_v41 = vpop.permute.xlu0 %5459 }
 0x689   : > { %10365 = vpow2.f32 %v5449_v12  ;;  %v5448_v35 = vsub.f32 %v11568_v49, %v5446_v22  ;;  %v5475_v60 = vand.u32 4294901760, %v5460_v41 }
 0x68b   : > { %v5451_v36 = vmul.f32 1.442695, %v5448_v35 }
 0x68c   : > { %v5464_v12 = vpop.permute.xlu0 %5463 }
 0x68d   : > { %10367 = vpow2.f32 %v5451_v36 }
 0x68e   : > { %9510 = vmatpush3.xpose.msra.mxu1 %v6632_v57  ;;  %10369 = vrcp.f32 %v11577_v46 }
 0x68f   : > { %10024 = vmatprep.subr.bf16.mxu1 %v11597_v39  ;;  %10371 = vrcp.f32 %v11579_v1 }
 0x691   : > { %9512 = vmatmul.mubr.f32.vlgmr.msra.gmra.mrb[14].mxu1 %v11603_v10 }
 0x692   : > { %10026 = vmatpush3.bf16.xpose.msra.mxu1 %v11597_v39  ;;  %9520 = vmatprep.mubr.f32.mxu1 %v11606_v14  ;;  %v4408_v14 = vand.u32 4294901760, %v2798_v34 }
 0x693   : > { %v11639_v47 = vpop.eup %10365  ;;  %9518 = vmatprep.subr.mxu1 %v6534_v2 }
 0x694   : > { %v5453_v13 = vsel %vm2242_vm3, %v11639_v47, 0.0  ;;  %v4500_v55 = vsub.f32 %v2798_v34, %v4408_v14  ;;  %v9907_v32 = vpack.c.bf16 %v4408_v14, %v4405_v43  ;;  %v5469_v61 = vsel %vm2242_vm3, %v11639_v47, 0  ;;  %v10385_v43 = vld [vmem:[%s11412_s24] ss:$0 sm:$0xff]  ;;  %s10536_s24 = scalar_lea.vmem %s10535_s20, 512 }
 0x695   : > { %5454 = vadd.xlane.f32.xlu1 %v5453_v13  ;;  %v11675_v52 = vand.u32 4294901760, %v5469_v61  ;;  %v5564_v47 = vsub.f32 %v5460_v41, %v5475_v60  ;;  %v5481_v13 = vand.u32 4294901760, %v5464_v12  ;;  %p10538_p10 = scmp.lt.s32.totalorder %s10536_s24, %s10530_s13 }
 0x696   : > { %v4501_v18 = vand.u32 4294901760, %v4500_v55  ;;  %v9915_v17 = vpack.c.bf16 %v4500_v55, %v4493_v16 }
 0x697   : > { %v11643_v45 = vpop.eup %10367  ;;  %v5543_v22 = vsub.f32 %v5469_v61, %v11675_v52  ;;  %p10539_p3 = por %p10538_p10, %p10537_p6 }
 0x698   : > { %v5456_v49 = vsel %vm2242_vm3, %v11643_v45, 0.0  ;;  %v10370_v3 = vpop.eup %10369  ;;  %v4502_v33 = vsub.f32 %v4500_v55, %v4501_v18  ;;  %v5472_v54 = vsel %vm2242_vm3, %v11643_v45, 0 }
 0x699   : > { %5457 = vadd.xlane.f32.xlu0 %v5456_v49  ;;  %v10372_v38 = vpop.eup %10371  ;;  %v11681_v35 = vand.u32 4294901760, %v5472_v54  ;;  %v5544_v49 = vand.u32 4294901760, %v5543_v22  ;;  %p10540_p9 = pnand %p10539_p3, %p10533_p8 }
 0x69a   : > { %9519 = vmatpush3.xpose.msra.mxu1 %v6534_v2  ;;  %v4503_v8 = vand.u32 4294901760, %v4502_v33 }
 0x69b   : > { %v5553_v45 = vsub.f32 %v5472_v54, %v11681_v35 }
 0x69d   : > { %9521 = vmatmul.mubr.f32.vlgmr.msra.gmra.mrb[14].mxu1 %v11603_v10 }
 0x6c0   : > { %v9234_v7 = vpop.f32.mrb[4].mxu0 }
 0x6c1   : > { %v3887_v21 = vmul.f32 %v10370_v3, %v9234_v7  ;;  %v3872_v11 = vpop.f32.mrb[5].mxu0 }
 0x6c2   : > { %v3886_v28 = vmul.f32 %v10372_v38, %v3872_v11  ;;  %v5565_v38 = vand.u32 4294901760, %v5564_v47  ;;  %v5545_v11 = vsub.f32 %v5543_v22, %v5544_v49 }
 0x6c3   : > { %v3894_v40 = vsel %vm1711_vm2, %v3887_v21, 0  ;;  %v5578_v21 = vsub.f32 %v5464_v12, %v5481_v13 }
 0x6c4   : > { %v3973_v15 = vand.u32 4294901760, %v3894_v40  ;;  %v3891_v30 = vsel %vm1711_vm2, %v3886_v28, 0 }
 0x6c5   : > { %v3963_v23 = vand.u32 4294901760, %v3891_v30 }
 0x6c6   : > { %v3974_v39 = vsub.f32 %v3894_v40, %v3973_v15  ;;  %v5554_v40 = vand.u32 4294901760, %v5553_v45 }
 0x6c7   : > { %v3964_v44 = vsub.f32 %v3891_v30, %v3963_v23  ;;  %v5579_v30 = vand.u32 4294901760, %v5578_v21 }
 0x6c8   : > { %v3975_v29 = vand.u32 4294901760, %v3974_v39 }
 0x6c9   : > { %v3965_v50 = vand.u32 4294901760, %v3964_v44 }
 0x6ca   : > { %v3976_v42 = vsub.f32 %v3974_v39, %v3975_v29 }
 0x6cb   : > { %v3966_v46 = vsub.f32 %v3964_v44, %v3965_v50 }
 0x6cc   : > { %v3977_v1 = vand.u32 4294901760, %v3976_v42 }
 0x6cd   : > { %v3967_v10 = vand.u32 4294901760, %v3966_v46 }
 0x6cf   : > { %9239 = vmatprep.mubr.f32.mxu0 %v3967_v10 }
 0x6d0   : > { %9240 = vmatmul.mubr.f32.vlgmr.msra.gmra.mrb[6].mxu0 %v3977_v1 }
 0x6d1   : > { %9890 = vmatpush3.bf16.msra.mxu0 %v11600_v37  ;;  %9246 = vmatprep.mubr.f32.mxu0 %v3963_v23  ;;  %v4399_v37 = vsel %vm1711_vm2, %v11611_v59, 0  ;;  %v4495_v59 = vsub.f32 %v4493_v16, %v4494_v63 }
 0x6d2   : > { %9892 = vmatprep.subr.bf16.mxu0 %v11623_v31  ;;  %v11660_v62 = vand.u32 4294901760, %v4399_v37 }
 0x6d3   : > { %v4496_v6 = vand.u32 4294901760, %v4495_v59 }
 0x6d4   : > { %v4472_v25 = vsub.f32 %v4399_v37, %v11660_v62 }
 0x6d5   : > { %v9911_v24 = vpack.c.bf16 %v4503_v8, %v4496_v6 }
 0x6d6   : > { %v4473_v2 = vand.u32 4294901760, %v4472_v25 }
 0x6d8   : > { %9247 = vmatmul.mubr.f32.vlgmr.msra.gmra.mrb[6].mxu0 %v3973_v15  ;;  %v4474_v0 = vsub.f32 %v4472_v25, %v4473_v2 }
 0x6d9   : > { %9894 = vmatpush3.bf16.msra.mxu0 %v11623_v31  ;;  %9253 = vmatprep.mubr.f32.mxu0 %v3964_v44  ;;  %v11667_v31 = vand.u32 4294901760, %v4402_v58 }
 0x6da   : > { %9896 = vmatprep.subr.bf16.mxu0 %v11581_v4  ;;  %v4475_v9 = vand.u32 4294901760, %v4474_v0 }
 0x6db   : > { %v4482_v5 = vsub.f32 %v4402_v58, %v11667_v31 }
 0x6dd   : > { %v4483_v26 = vand.u32 4294901760, %v4482_v5 }
 0x6df   : > { %v4484_v56 = vsub.f32 %v4482_v5, %v4483_v26 }
 0x6e0   : > { %9254 = vmatmul.mubr.f32.vlgmr.msra.gmra.mrb[6].mxu0 %v3974_v39  ;;  %v5555_v39 = vsub.f32 %v5553_v45, %v5554_v40 }
 0x6e1   : > { %9898 = vmatpush3.bf16.msra.mxu0 %v11581_v4  ;;  %9260 = vmatprep.mubr.f32.mxu0 %v3965_v50  ;;  %v4485_v57 = vand.u32 4294901760, %v4484_v56  ;;  %v5580_v50 = vsub.f32 %v5578_v21, %v5579_v30 }
 0x6e2   : > { %9900 = vmatprep.subr.bf16.mxu0 %v11626_v51  ;;  %v5556_v42 = vand.u32 4294901760, %v5555_v39 }
 0x6e3   : > { %v5581_v10 = vand.u32 4294901760, %v5580_v50 }
 0x6e8   : > { %9261 = vmatmul.mubr.f32.vlgmr.msra.gmra.mrb[6].mxu0 %v3975_v29 }
 0x6e9   : > { %9902 = vmatpush3.bf16.msra.mxu0 %v11626_v51  ;;  %9267 = vmatprep.mubr.f32.mxu0 %v3963_v23  ;;  %v5462_v51 = vpop.permute.xlu1 %5461 }
 0x6ea   : > { %9904 = vmatprep.subr.bf16.mxu0 %v11581_v4  ;;  %v5478_v53 = vand.u32 4294901760, %v5462_v51 }
 0x6ec   : > { %v5571_v36 = vsub.f32 %v5462_v51, %v5478_v53  ;;  %v9955_v3 = vpack.c.bf16 %v5478_v53, %v5475_v60 }
 0x6ee   : > { %v5572_v7 = vand.u32 4294901760, %v5571_v36  ;;  %v9963_v1 = vpack.c.bf16 %v5571_v36, %v5564_v47 }
 0x6f0   : > { %9268 = vmatmul.mubr.f32.vlgmr.msra.gmra.mrb[6].mxu0 %v3973_v15  ;;  %v5573_v28 = vsub.f32 %v5571_v36, %v5572_v7  ;;  %v9971_v20 = vpack.c.bf16 %v5572_v7, %v5565_v38 }
 0x6f1   : > { %9906 = vmatpush3.bf16.msra.mxu0 %v11581_v4  ;;  %9274 = vmatprep.mubr.f32.mxu0 %v3963_v23  ;;  %v9923_v4 = vpack.c.bf16 %v4501_v18, %v4494_v63  ;;  %v5546_v23 = vand.u32 4294901760, %v5545_v11  ;;  %v5995_v63 = vld [vmem:[#allocation10 + $0x20] sm:$0xff]  ;;  %v5996_v18 = vld [vmem:[#allocation10 + $0x28] sm:$0xff] }
 0x6f2   : > { %9908 = vmatprep.subr.bf16.mxu0 %v9907_v32  ;;  %v5574_v44 = vand.u32 4294901760, %v5573_v28  ;;  %v6007_v58 = vand.u32 4294901760, %v5996_v18 }
 0x6f4   : > { %v6099_v59 = vsub.f32 %v5996_v18, %v6007_v58 }
 0x6f8   : > { %9275 = vmatmul.mubr.f32.vlgmr.msra.gmra.mrb[6].mxu0 %v3973_v15  ;;  %v5566_v15 = vsub.f32 %v5564_v47, %v5565_v38 }
 0x6f9   : > { %9910 = vmatpush3.bf16.msra.mxu0 %v9907_v32  ;;  %9281 = vmatprep.mubr.f32.mxu0 %v4475_v9 }
 0x6fa   : > { %9912 = vmatprep.subr.bf16.mxu0 %v9911_v24  ;;  %v5567_v29 = vand.u32 4294901760, %v5566_v15 }
 0x6fc   : > { %v9959_v46 = vpack.c.bf16 %v5574_v44, %v5567_v29 }
 0x700   : > { %9282 = vmatmul.mubr.f32.vlgmr.msra.gmra.mrb[6].mxu0 %v4485_v57 }
 0x701   : > { %9914 = vmatpush3.bf16.msra.mxu0 %v9911_v24  ;;  %9288 = vmatprep.mubr.f32.mxu0 %v11660_v62 }
 0x702   : > { %9916 = vmatprep.subr.bf16.mxu0 %v9915_v17 }
 0x708   : > { %9289 = vmatmul.mubr.f32.vlgmr.msra.gmra.mrb[6].mxu0 %v11667_v31 }
 0x709   : > { %9918 = vmatpush3.bf16.msra.mxu0 %v9915_v17  ;;  %9295 = vmatprep.mubr.f32.mxu0 %v4472_v25  ;;  %v6004_v25 = vand.u32 4294901760, %v5995_v63 }
 0x70a   : > { %9920 = vmatprep.subr.bf16.mxu0 %v9907_v32 }
 0x710   : > { %9296 = vmatmul.mubr.f32.vlgmr.msra.gmra.mrb[6].mxu0 %v4482_v5 }
 0x711   : > { %9922 = vmatpush3.bf16.msra.mxu0 %v9907_v32  ;;  %9302 = vmatprep.mubr.f32.mxu0 %v4473_v2  ;;  %v6100_v2 = vand.u32 4294901760, %v6099_v59 }
 0x712   : > { %9924 = vmatprep.subr.bf16.mxu0 %v9923_v4 }
 0x718   : > { %9303 = vmatmul.mubr.f32.vlgmr.msra.gmra.mrb[6].mxu0 %v4483_v26 }
 0x719   : > { %9926 = vmatpush3.bf16.msra.mxu0 %v9923_v4  ;;  %9309 = vmatprep.mubr.f32.mxu0 %v11660_v62 }
 0x71a   : > { %9928 = vmatprep.subr.bf16.mxu0 %v9907_v32 }
 0x720   : > { %9310 = vmatmul.mubr.f32.vlgmr.msra.gmra.mrb[6].mxu0 %v11667_v31 }
 0x721   : > { %9930 = vmatpush3.bf16.msra.mxu0 %v9907_v32  ;;  %9316 = vmatprep.mubr.f32.mxu0 %v11660_v62  ;;  %v11699_v32 = vpack.c.bf16 %v6007_v58, %v6004_v25 }
 0x722   : > { %9956 = vmatprep.subr.bf16.mxu0 %v9955_v3  ;;  %v5455_v26 = vpop.xlane.xlu1 %5454 }
 0x726   : > { %v5458_v24 = vpop.xlane.xlu0 %5457 }
 0x728   : > { %9317 = vmatmul.mubr.f32.vlgmr.msra.gmra.mrb[6].mxu0 %v11667_v31  ;;  %v6092_v31 = vsub.f32 %v5995_v63, %v6004_v25 }
 0x729   : > { %9958 = vmatpush3.bf16.msra.mxu0 %v9955_v3  ;;  %9379 = vmatprep.mubr.f32.mxu0 %v5546_v23 }
 0x72a   : > { %9377 = vmatprep.subr.mxu0 %v5481_v13  ;;  %v6093_v33 = vand.u32 4294901760, %v6092_v31 }
 0x72c   : > { %v6094_v5 = vsub.f32 %v6092_v31, %v6093_v33  ;;  %v9995_v0 = vpack.c.bf16 %v6100_v2, %v6093_v33 }
 0x72d   : > { %9378 = vmatpush3.msra.mxu0 %v5481_v13 }
 0x72e   : > { %9380 = vmatmul.mubr.f32.vlgmr.msra.gmra.mrb[8].mxu0 %v5556_v42  ;;  %9960 = vmatprep.subr.bf16.mxu0 %v9959_v46  ;;  %v6095_v6 = vand.u32 4294901760, %v6094_v5 }
 0x72f   : > { %9962 = vmatpush3.bf16.msra.mxu0 %v9959_v46  ;;  %9388 = vmatprep.mubr.f32.mxu0 %v11675_v52 }
 0x730   : > { %9386 = vmatprep.subr.mxu0 %v5581_v10 }
 0x733   : > { %9387 = vmatpush3.msra.mxu0 %v5581_v10 }
 0x734   : > { %9964 = vmatprep.subr.bf16.mxu0 %v9963_v1 }
 0x736   : > { %9389 = vmatmul.mubr.f32.vlgmr.msra.gmra.mrb[8].mxu0 %v11681_v35 }
 0x737   : > { %9966 = vmatpush3.bf16.msra.mxu0 %v9963_v1  ;;  %9397 = vmatprep.mubr.f32.mxu0 %v5543_v22 }
 0x738   : > { %9395 = vmatprep.subr.mxu0 %v5578_v21 }
 0x73b   : > { %9396 = vmatpush3.msra.mxu0 %v5578_v21 }
 0x73c   : > { %9968 = vmatprep.subr.bf16.mxu0 %v9955_v3 }
 0x73e   : > { %9398 = vmatmul.mubr.f32.vlgmr.msra.gmra.mrb[8].mxu0 %v5553_v45 }
 0x73f   : > { %9970 = vmatpush3.bf16.msra.mxu0 %v9955_v3  ;;  %9406 = vmatprep.mubr.f32.mxu0 %v5544_v49 }
 0x740   : > { %9404 = vmatprep.subr.mxu0 %v5481_v13 }
 0x743   : > { %9405 = vmatpush3.msra.mxu0 %v5481_v13 }
 0x744   : > { %9972 = vmatprep.subr.bf16.mxu0 %v9971_v20 }
 0x746   : > { %9407 = vmatmul.mubr.f32.vlgmr.msra.gmra.mrb[8].mxu0 %v5554_v40 }
 0x747   : > { %9974 = vmatpush3.bf16.msra.mxu0 %v9971_v20  ;;  %9415 = vmatprep.mubr.f32.mxu0 %v11675_v52 }
 0x748   : > { %9413 = vmatprep.subr.mxu0 %v5579_v30 }
 0x74b   : > { %9414 = vmatpush3.msra.mxu0 %v5579_v30 }
 0x74c   : > { %9976 = vmatprep.subr.bf16.mxu0 %v9955_v3 }
 0x74e   : > { %9416 = vmatmul.mubr.f32.vlgmr.msra.gmra.mrb[8].mxu0 %v11681_v35 }
 0x74f   : > { %9978 = vmatpush3.bf16.msra.mxu0 %v9955_v3  ;;  %9424 = vmatprep.mubr.f32.mxu0 %v11675_v52 }
 0x750   : > { %9422 = vmatprep.subr.mxu0 %v5481_v13 }
 0x753   : > { %9423 = vmatpush3.msra.mxu0 %v5481_v13 }
 0x754   : > { %9980 = vmatprep.subr.bf16.mxu0 %v11699_v32 }
 0x756   : > { %9425 = vmatmul.mubr.f32.vlgmr.msra.gmra.mrb[8].mxu0 %v11681_v35 }
 0x757   : > { %9982 = vmatpush3.bf16.msra.mxu0 %v11699_v32 }
 0x770   : > { %v9522_v34 = vpop.f32.mrb[14].mxu1 }
 0x771   : > { %v10088_v14 = vadd.f32 %v10385_v43, %v9522_v34  ;;  %v7032_v37 = vpop.f32.mrb[15].mxu1 }
 0x772   : > { %v10089_v16 = vadd.f32 %v10385_v43, %v7032_v37 }
 0x773   : > { %v7045_v55 = vsel %vm2242_vm3, %v10088_v14, -inf }
 0x774   : > { %7046 = vmax.xlane.f32.xlu1 %v7045_v55  ;;  %v7042_v62 = vsel %vm2242_vm3, %v10089_v16, -inf }
 0x775   : > { %7043 = vmax.xlane.f32.xlu0 %v7042_v62 }
 0x785   : > { %7062 = vrot.lane.b32.xlu1 %v11368_v19, %s10626_s5  ;;  %v6101_v19 = vsub.f32 %v6099_v59, %v6100_v2 }
 0x789   : > { %7064 = vrot.lane.b32.xlu1 %v11378_v27, %s10626_s5  ;;  %v6102_v27 = vand.u32 4294901760, %v6101_v19 }
 0x78b   : > { %7060 = vrot.lane.b32.xlu0 %v11354_v48, %s10626_s5  ;;  %v9983_v8 = vpack.c.bf16 %v6102_v27, %v6095_v6  ;;  %v9987_v48 = vpack.c.bf16 %v6099_v59, %v6092_v31 }
 0x78d   : > { %9984 = vmatprep.subr.bf16.mxu0 %v9983_v8 }
 0x801   : > { %v7047_v9 = vpop.xlane.xlu1 %7046 }
 0x802   : > { %v7049_v56 = vsub.f32 %v10088_v14, %v7047_v9  ;;  %v7044_v57 = vpop.xlane.xlu0 %7043 }
 0x803   : > { %v7048_v17 = vsub.f32 %v10089_v16, %v7044_v57 }
 0x804   : > { %v7052_v4 = vmul.f32 1.442695, %v7049_v56 }
 0x805   : > { %v7050_v61 = vmul.f32 1.442695, %v7048_v17  ;;  %v7063_v23 = vpop.permute.xlu1 %7062 }
 0x806   : > { %10373 = vpow2.f32 %v7052_v4  ;;  %v7061_v39 = vpop.permute.xlu0 %7060  ;;  %v7079_v29 = vand.u32 4294901760, %v7063_v23 }
 0x807   : > { %10375 = vpow2.f32 %v7050_v61  ;;  %v7076_v50 = vand.u32 4294901760, %v7061_v39 }
 0x808   : > { %10377 = vrcp.f32 %v5458_v24  ;;  %v7172_v20 = vsub.f32 %v7063_v23, %v7079_v29  ;;  %v7597_v24 = vld [vmem:[#allocation10 + $0x38] sm:$0xff] }
 0x809   : > { %10379 = vrcp.f32 %v5455_v26  ;;  %v7065_v46 = vpop.permute.xlu1 %7064  ;;  %v7165_v34 = vsub.f32 %v7061_v39, %v7076_v50  ;;  %v10027_v16 = vpack.c.bf16 %v7079_v29, %v7076_v50  ;;  %v7596_v26 = vld [vmem:[#allocation10 + $0x30] sm:$0xff]  ;;  %v7608_v56 = vand.u32 4294901760, %v7597_v24 }
 0x80a   : > { %v7082_v43 = vand.u32 4294901760, %v7065_v46  ;;  %v7173_v37 = vand.u32 4294901760, %v7172_v20  ;;  %v7605_v9 = vand.u32 4294901760, %v7596_v26 }
 0x80b   : > { %v7166_v55 = vand.u32 4294901760, %v7165_v34  ;;  %v7700_v4 = vsub.f32 %v7597_v24, %v7608_v56 }
 0x80c   : > { %v7179_v63 = vsub.f32 %v7065_v46, %v7082_v43  ;;  %v7174_v25 = vsub.f32 %v7172_v20, %v7173_v37  ;;  %v10051_v57 = vpack.c.bf16 %v7608_v56, %v7605_v9  ;;  %v7693_v17 = vsub.f32 %v7596_v26, %v7605_v9 }
 0x80d   : > { %v7167_v58 = vsub.f32 %v7165_v34, %v7166_v55 }
 0x80e   : > { %v7180_v59 = vand.u32 4294901760, %v7179_v63  ;;  %v7175_v19 = vand.u32 4294901760, %v7174_v25  ;;  %v7694_v61 = vand.u32 4294901760, %v7693_v17 }
 0x80f   : > { %v7168_v5 = vand.u32 4294901760, %v7167_v58 }
 0x810   : > { %v10374_v41 = vpop.eup %10373  ;;  %v7181_v6 = vsub.f32 %v7179_v63, %v7180_v59 }
 0x811   : > { %v10376_v51 = vpop.eup %10375  ;;  %v7057_v52 = vsel %vm2242_vm3, %v10374_v41, 0.0  ;;  %v7073_v42 = vsel %vm2242_vm3, %v10374_v41, 0  ;;  %v7701_v41 = vand.u32 4294901760, %v7700_v4 }
 0x812   : > { %7058 = vadd.xlane.f32.xlu1 %v7057_v52  ;;  %v7054_v53 = vsel %vm2242_vm3, %v10376_v51, 0.0  ;;  %v10378_v54 = vpop.eup %10377  ;;  %v7070_v30 = vsel %vm2242_vm3, %v10376_v51, 0  ;;  %v11715_v1 = vand.u32 4294901760, %v7073_v42  ;;  %v7695_v51 = vsub.f32 %v7693_v17, %v7694_v61 }
 0x813   : > { %7055 = vadd.xlane.f32.xlu0 %v7054_v53  ;;  %v10380_v12 = vpop.eup %10379  ;;  %v11710_v44 = vand.u32 4294901760, %v7070_v30  ;;  %v7702_v52 = vsub.f32 %v7700_v4, %v7701_v41 }
 0x814   : > { %v7154_v62 = vsub.f32 %v7073_v42, %v11715_v1  ;;  %v7696_v53 = vand.u32 4294901760, %v7695_v51  ;;  %v8285_v42 = vld [vmem:[%s11792_s8] ss:$0 sm:$0xff] }
 0x815   : > { %v7144_v10 = vsub.f32 %v7070_v30, %v11710_v44 }
 0x816   : > { %v7155_v31 = vand.u32 4294901760, %v7154_v62 }
 0x817   : > { %v7145_v14 = vand.u32 4294901760, %v7144_v10 }
 0x818   : > { %v7156_v2 = vsub.f32 %v7154_v62, %v7155_v31 }
 0x819   : > { %v7146_v18 = vsub.f32 %v7144_v10, %v7145_v14 }
 0x81a   : > { %v7157_v27 = vand.u32 4294901760, %v7156_v2 }
 0x81b   : > { %v7147_v33 = vand.u32 4294901760, %v7146_v18 }
 0x829   : > { %v9426_v60 = vpop.f32.mrb[8].mxu0 }
 0x82a   : > { %v5994_v22 = vmul.f32 %v10378_v54, %v9426_v60  ;;  %v5979_v35 = vpop.f32.mrb[9].mxu0  ;;  %v7703_v54 = vand.u32 4294901760, %v7702_v52 }
 0x82b   : > { %v5993_v36 = vmul.f32 %v10380_v12, %v5979_v35  ;;  %v10059_v12 = vpack.c.bf16 %v7700_v4, %v7693_v17 }
 0x82c   : > { %v6001_v47 = vsel %vm1711_vm2, %v5994_v22, 0  ;;  %v10055_v60 = vpack.c.bf16 %v7703_v54, %v7696_v53  ;;  %v10067_v22 = vpack.c.bf16 %v7701_v41, %v7694_v61 }
 0x82d   : > { %v6080_v13 = vand.u32 4294901760, %v6001_v47  ;;  %v5998_v49 = vsel %vm1711_vm2, %v5993_v36, 0 }
 0x82e   : > { %v6070_v3 = vand.u32 4294901760, %v5998_v49 }
 0x82f   : > { %v6081_v7 = vsub.f32 %v6001_v47, %v6080_v13 }
 0x830   : > { %v6071_v45 = vsub.f32 %v5998_v49, %v6070_v3 }
 0x831   : > { %v6082_v38 = vand.u32 4294901760, %v6081_v7 }
 0x832   : > { %v6072_v21 = vand.u32 4294901760, %v6071_v45 }
 0x833   : > { %v6083_v11 = vsub.f32 %v6081_v7, %v6082_v38 }
 0x834   : > { %v6073_v28 = vsub.f32 %v6071_v45, %v6072_v21 }
 0x835   : > { %v6084_v15 = vand.u32 4294901760, %v6083_v11 }
 0x836   : > { %v6074_v40 = vand.u32 4294901760, %v6073_v28 }
 0x838   : > { %9431 = vmatprep.mubr.f32.mxu0 %v6074_v40 }
 0x839   : > { %9432 = vmatmul.mubr.f32.vlgmr.msra.gmra.mrb[6].mxu0 %v6084_v15 }
 0x83a   : > { %9986 = vmatpush3.bf16.msra.mxu0 %v9983_v8  ;;  %9438 = vmatprep.mubr.f32.mxu0 %v6070_v3  ;;  %v10031_v8 = vpack.c.bf16 %v7175_v19, %v7168_v5 }
 0x83b   : > { %9988 = vmatprep.subr.bf16.mxu0 %v9987_v48 }
 0x841   : > { %9439 = vmatmul.mubr.f32.vlgmr.msra.gmra.mrb[6].mxu0 %v6080_v13 }
 0x842   : > { %9990 = vmatpush3.bf16.msra.mxu0 %v9987_v48  ;;  %9445 = vmatprep.mubr.f32.mxu0 %v6071_v45  ;;  %v10035_v48 = vpack.c.bf16 %v7172_v20, %v7165_v34 }
 0x843   : > { %9992 = vmatprep.subr.bf16.mxu0 %v11699_v32 }
 0x849   : > { %9446 = vmatmul.mubr.f32.vlgmr.msra.gmra.mrb[6].mxu0 %v6081_v7 }
 0x84a   : > { %9994 = vmatpush3.bf16.msra.mxu0 %v11699_v32  ;;  %9452 = vmatprep.mubr.f32.mxu0 %v6072_v21 }
 0x84b   : > { %9996 = vmatprep.subr.bf16.mxu0 %v9995_v0 }
 0x851   : > { %9453 = vmatmul.mubr.f32.vlgmr.msra.gmra.mrb[6].mxu0 %v6082_v38 }
 0x852   : > { %9998 = vmatpush3.bf16.msra.mxu0 %v9995_v0  ;;  %9459 = vmatprep.mubr.f32.mxu0 %v6070_v3  ;;  %v10043_v0 = vpack.c.bf16 %v7173_v37, %v7166_v55 }
 0x853   : > { %10000 = vmatprep.subr.bf16.mxu0 %v11699_v32 }
 0x859   : > { %9460 = vmatmul.mubr.f32.vlgmr.msra.gmra.mrb[6].mxu0 %v6080_v13 }
 0x85a   : > { %10002 = vmatpush3.bf16.msra.mxu0 %v11699_v32  ;;  %9466 = vmatprep.mubr.f32.mxu0 %v6070_v3  ;;  %v7182_v32 = vand.u32 4294901760, %v7181_v6 }
 0x85b   : > { %10028 = vmatprep.subr.bf16.mxu0 %v10027_v16 }
 0x861   : > { %9467 = vmatmul.mubr.f32.vlgmr.msra.gmra.mrb[6].mxu0 %v6080_v13 }
 0x862   : > { %10030 = vmatpush3.bf16.msra.mxu0 %v10027_v16  ;;  %9529 = vmatprep.mubr.f32.mxu0 %v7147_v33 }
 0x863   : > { %9527 = vmatprep.subr.mxu0 %v7082_v43 }
 0x866   : > { %9528 = vmatpush3.msra.mxu0 %v7082_v43 }
 0x867   : > { %9530 = vmatmul.mubr.f32.vlgmr.msra.gmra.mrb[10].mxu0 %v7157_v27  ;;  %10032 = vmatprep.subr.bf16.mxu0 %v10031_v8 }
 0x868   : > { %10034 = vmatpush3.bf16.msra.mxu0 %v10031_v8  ;;  %9538 = vmatprep.mubr.f32.mxu0 %v11710_v44 }
 0x869   : > { %9536 = vmatprep.subr.mxu0 %v7182_v32 }
 0x86c   : > { %9537 = vmatpush3.msra.mxu0 %v7182_v32 }
 0x86d   : > { %10036 = vmatprep.subr.bf16.mxu0 %v10035_v48 }
 0x86f   : > { %9539 = vmatmul.mubr.f32.vlgmr.msra.gmra.mrb[10].mxu0 %v11715_v1 }
 0x870   : > { %10038 = vmatpush3.bf16.msra.mxu0 %v10035_v48  ;;  %9547 = vmatprep.mubr.f32.mxu0 %v7144_v10 }
 0x871   : > { %9545 = vmatprep.subr.mxu0 %v7179_v63 }
 0x874   : > { %9546 = vmatpush3.msra.mxu0 %v7179_v63 }
 0x875   : > { %10040 = vmatprep.subr.bf16.mxu0 %v10027_v16 }
 0x877   : > { %9548 = vmatmul.mubr.f32.vlgmr.msra.gmra.mrb[10].mxu0 %v7154_v62 }
 0x878   : > { %10042 = vmatpush3.bf16.msra.mxu0 %v10027_v16  ;;  %9556 = vmatprep.mubr.f32.mxu0 %v7145_v14 }
 0x879   : > { %9554 = vmatprep.subr.mxu0 %v7082_v43 }
 0x87c   : > { %9555 = vmatpush3.msra.mxu0 %v7082_v43 }
 0x87d   : > { %10044 = vmatprep.subr.bf16.mxu0 %v10043_v0 }
 0x87f   : > { %9557 = vmatmul.mubr.f32.vlgmr.msra.gmra.mrb[10].mxu0 %v7155_v31 }
 0x880   : > { %10046 = vmatpush3.bf16.msra.mxu0 %v10043_v0  ;;  %9565 = vmatprep.mubr.f32.mxu0 %v11710_v44 }
 0x881   : > { %9563 = vmatprep.subr.mxu0 %v7180_v59 }
 0x884   : > { %9564 = vmatpush3.msra.mxu0 %v7180_v59 }
 0x885   : > { %10048 = vmatprep.subr.bf16.mxu0 %v10027_v16 }
 0x887   : > { %9566 = vmatmul.mubr.f32.vlgmr.msra.gmra.mrb[10].mxu0 %v11715_v1 }
 0x888   : > { %10050 = vmatpush3.bf16.msra.mxu0 %v10027_v16  ;;  %9574 = vmatprep.mubr.f32.mxu0 %v11710_v44 }
 0x889   : > { %9572 = vmatprep.subr.mxu0 %v7082_v43 }
 0x88c   : > { %9573 = vmatpush3.msra.mxu0 %v7082_v43 }
 0x88d   : > { %10052 = vmatprep.subr.bf16.mxu0 %v10051_v57 }
 0x88f   : > { %9575 = vmatmul.mubr.f32.vlgmr.msra.gmra.mrb[10].mxu0 %v11715_v1 }
 0x890   : > { %10054 = vmatpush3.bf16.msra.mxu0 %v10051_v57 }
 0x891   : > { %10056 = vmatprep.subr.bf16.mxu0 %v10055_v60 }
 0x89f   : > { %v7059_v35 = vpop.xlane.xlu1 %7058 }
 0x8a0   : > { %v7056_v36 = vpop.xlane.xlu0 %7055  ;;  %10381 = vrcp.f32 %v7059_v35 }
 0x8a1   : > { %10383 = vrcp.f32 %v7056_v36 }
 0x8aa   : > { %v10382_v47 = vpop.eup %10381 }
 0x8ab   : > { %v10384_v49 = vpop.eup %10383 }
 0x962   : > { %v9576_v13 = vpop.f32.mrb[10].mxu0 }
 0x963   : > { %v7595_v3 = vmul.f32 %v10382_v47, %v9576_v13  ;;  %v7580_v7 = vpop.f32.mrb[11].mxu0 }
 0x964   : > { %v7594_v45 = vmul.f32 %v10384_v49, %v7580_v7 }
 0x965   : > { %v7602_v38 = vsel %vm1711_vm2, %v7595_v3, 0 }
 0x966   : > { %v7681_v21 = vand.u32 4294901760, %v7602_v38  ;;  %v7599_v11 = vsel %vm1711_vm2, %v7594_v45, 0 }
 0x967   : > { %v7671_v28 = vand.u32 4294901760, %v7599_v11 }
 0x968   : > { %v7682_v40 = vsub.f32 %v7602_v38, %v7681_v21 }
 0x969   : > { %v7672_v15 = vsub.f32 %v7599_v11, %v7671_v28 }
 0x96a   : > { %v7683_v30 = vand.u32 4294901760, %v7682_v40 }
 0x96b   : > { %v7673_v23 = vand.u32 4294901760, %v7672_v15 }
 0x96c   : > { %v7684_v39 = vsub.f32 %v7682_v40, %v7683_v30 }
 0x96d   : > { %v7674_v44 = vsub.f32 %v7672_v15, %v7673_v23 }
 0x96e   : > { %v7685_v50 = vand.u32 4294901760, %v7684_v39 }
 0x96f   : > { %v7675_v29 = vand.u32 4294901760, %v7674_v44 }
 0x971   : > { %9581 = vmatprep.mubr.f32.mxu0 %v7675_v29 }
 0x972   : > { %9582 = vmatmul.mubr.f32.vlgmr.msra.gmra.mrb[6].mxu0 %v7685_v50 }
 0x973   : > { %10058 = vmatpush3.bf16.msra.mxu0 %v10055_v60  ;;  %9588 = vmatprep.mubr.f32.mxu0 %v7671_v28 }
 0x974   : > { %10060 = vmatprep.subr.bf16.mxu0 %v10059_v12 }
 0x97a   : > { %9589 = vmatmul.mubr.f32.vlgmr.msra.gmra.mrb[6].mxu0 %v7681_v21 }
 0x97b   : > { %10062 = vmatpush3.bf16.msra.mxu0 %v10059_v12  ;;  %9595 = vmatprep.mubr.f32.mxu0 %v7672_v15 }
 0x97c   : > { %10064 = vmatprep.subr.bf16.mxu0 %v10051_v57 }
 0x982   : > { %9596 = vmatmul.mubr.f32.vlgmr.msra.gmra.mrb[6].mxu0 %v7682_v40 }
 0x983   : > { %10066 = vmatpush3.bf16.msra.mxu0 %v10051_v57  ;;  %9602 = vmatprep.mubr.f32.mxu0 %v7673_v23 }
 0x984   : > { %10068 = vmatprep.subr.bf16.mxu0 %v10067_v22 }
 0x98a   : > { %9603 = vmatmul.mubr.f32.vlgmr.msra.gmra.mrb[6].mxu0 %v7683_v30 }
 0x98b   : > { %10070 = vmatpush3.bf16.msra.mxu0 %v10067_v22  ;;  %9609 = vmatprep.mubr.f32.mxu0 %v7671_v28 }
 0x98c   : > { %10072 = vmatprep.subr.bf16.mxu0 %v10051_v57 }
 0x992   : > { %9610 = vmatmul.mubr.f32.vlgmr.msra.gmra.mrb[6].mxu0 %v7681_v21 }
 0x993   : > { %10074 = vmatpush3.bf16.msra.mxu0 %v10051_v57  ;;  %9616 = vmatprep.mubr.f32.mxu0 %v7671_v28 }
 0x99a   : > { %9617 = vmatmul.mubr.f32.vlgmr.msra.gmra.mrb[6].mxu0 %v7681_v21 }
 0xa6d   : > { %v9618_v46 = vpop.f32.mrb[6].mxu0 }
 0xa6e   : > { %v8116_v10 = vadd.f32 %v9618_v46, %v8285_v42  ;;  %v8096_v1 = vpop.f32.mrb[7].mxu0 }
 0xa6f   : > { %v8115_v20 = vadd.f32 %v8285_v42, %v8096_v1 }
 0xa70   : > { %8118 = vst.msk [vmem:[%s444_s17 + $0x8] sm:$0xff] %vm469_vm1, %v8116_v10 }
 0xa71   : > { %8117 = vst.msk [vmem:[%s444_s17] sm:$0xff] %vm469_vm1, %v8115_v20 }
 0xa72   : > { %10543 = shalt.err (!%p10540_p9)
}
 0xa73   : > { %s10544_s28 = scalar_lea.hbm %s11738_s3, 256  ;;  %s10548_s5 = scalar_lea.hbm %s11842_s19, 512 }
 0xa74   : > { %p10545_p13 = scmp.ne.s32.totalorder %s11738_s3, %s10544_s28  ;;  %p10549_p12 = scmp.lt.u32.totalorder %s11738_s3, %s11842_s19 }
 0xa75   : > { %p10550_p1 = scmp.lt.u32.totalorder %s10548_s5, %s10544_s28  ;;  %p10552_p4 = scmp.lt.u32.totalorder %s10544_s28, %s11738_s3 }
 0xa76   : > { %p10546_p11 = pnand %p10545_p13, %p10834_p5 }
 0xa77   : > { %p10551_p2 = por %p10550_p1, %p10549_p12 }
 0xa78   : > { %p10547_p7 = pneg %p10546_p11 }
 0xa79   : > { %p10553_p0 = por %p10552_p4, %p10551_p2 }
 0xa7b   : > { %p10554_p8 = pnand %p10553_p0, %p10547_p7 }
 0xa7d   : > { %10557 = shalt.err (!%p10554_p8)
}
 0xa7e   : > { %s10628_s25 = smov 128   ;;  %s10629_s29 = smov 8  }
 0xa7f   : > { %10273 = dma.vmem_to_hbm [thread:$0]  (%p10834_p5), %s11733_s26, 256, %s11738_s3, %s8120_s21, %s10628_s25, %s10628_s25, %s10629_s29  }
 0xa80 PF: > { %s11843_s23 = sld [smem:[#allocation17_spill]]  ;;  %s11844_s22 = sld [smem:[#allocation18_spill]] }
 0xa81   : > { %p11846_p10 = scmp.ge.s32.totalorder %s10608_s12, 2 }
 0xa86   : > { %s8148_s30 = sand.u32 1, %s11843_s23   ;;  %p11845_p6 = scmp.ne.s32.totalorder %s11844_s22, 0 }
 0xa87   : > { %s8149_s13 = scalar_lea.sflag [#allocation4], %s8148_s30 }
 0xa88   : > { %p10293_p3 = pnand %p11846_p10, %p11845_p6 }
 0xa8a   : > { %10591 = dma.done.wait (!%p10293_p3), %s8149_s13, 256  }
 0xa8b   : > { %10593 = vsyncadd (!%p10293_p3), %s8149_s13, 4294967040  ;;  %p26_p9 = scmp.ge.s32.totalorder %s10820_s14, 4   ;;  %s11847_s30 = smov %s10600_s10 }
 0xa8c   : > { %s11848_s10 = smov %s10604_s11  ;;  %s11849_s11 = smov %s10830_s16 }
 0xa8d   : > { %s11850_s12 = smov %s10820_s14  ;;  %28 = sbr.rel (!%p26_p9) target bundleno = 14 (0xe), region = 129 }
 0xa94   :  { %8154 = vsyncpa [#allocation3], 1 }
 0xa95   :  { %8156 = vsyncpa [#allocation3 + $0x1], 1 }
 0xa96   :  { %8157 = vsyncpa [#allocation6], 1 }
 0xa97   :  { %8159 = vsyncpa [#allocation6 + $0x1], 1 }
 0xa98   :  { %8160 = vsyncpa [#allocation9], 1 }
 0xa99   :  { %8161 = vsyncpa [#allocation4], 1 }
 0xa9a   :  { %8163 = vsyncpa [#allocation4 + $0x1], 1 }

</bundles_post_ra>
